<compile_context>
chip_gen: v5e
topology: v5e:2x2
jax: 0.10.0
libtpu: 0.0.40
codegen_flags: <defaults>
</compile_context>

<pallas_src>
import jax
import jax.numpy as jnp
from jax import lax
from jax.experimental import pallas as pl
from jax.experimental.pallas import tpu as pltpu

_COMPUTE_DTYPE = jnp.bfloat16
_HAS_BUFFERED = hasattr(pl, "Buffered")


# --------------------------------------------------------------------------
# Fused conv3x3 + bias + ReLU (+ optional maxpool 2x2) Pallas kernel
# --------------------------------------------------------------------------

def _make_conv_kernel(pool, need_relu, deep_k):
    def kernel(x_ref, halo_ref, w_ref, b_ref, *rest):
        rest = list(rest)
        o_ref = rest.pop(0) if need_relu else None
        p_ref = rest.pop(0) if pool else None
        xpad_ref, xflat_ref, acc_ref = rest

        _, TH, W, Cin = x_ref.shape
        Cout = w_ref.shape[-1]

        # ---- zero-padded (TH+2, W+2, Cin) row band in VMEM scratch ----------
        zcol = jnp.zeros((TH + 2, 1, Cin), xpad_ref.dtype)
        xpad_ref[:, 0:1, :] = zcol
        xpad_ref[:, W + 1:W + 2, :] = zcol
        xpad_ref[0:1, 1:W + 1, :] = halo_ref[0, 0:1]            # row above tile
        xpad_ref[1:TH + 1, 1:W + 1, :] = x_ref[0]               # interior rows
        xpad_ref[TH + 1:TH + 2, 1:W + 1, :] = halo_ref[0, 1:2]  # row below tile
        # TODO(synk): the full interior copy + (W+2)-wide scratch could be
        # replaced by pltpu.roll dx-shifts with first/last-column masking once
        # the kernel is MXU-bound again.

        # ---- MXU matmuls, f32 accumulation in VMEM scratch -------------------
        if deep_k:
            # dx taps concatenated along channels: 3 matmuls with K = 3*Cin.
            xflat_ref[...] = jnp.concatenate(
                [xpad_ref[:, 0:W, :], xpad_ref[:, 1:W + 1, :],
                 xpad_ref[:, 2:W + 2, :]], axis=-1,
            ).reshape((TH + 2) * W, 3 * Cin)
            for dy in range(3):
                patch = xflat_ref[dy * W:dy * W + TH * W, :]
                upd = jnp.dot(patch, w_ref[dy],
                              preferred_element_type=jnp.float32)
                if dy == 0:
                    acc_ref[...] = upd
                else:
                    acc_ref[...] += upd
        else:
            # Cin >= 256: K already saturates the MXU; 9 taps, but each
            # dx-shifted buffer is flattened only once (3 relayouts, not 9).
            for dx in range(3):
                xflat_ref[...] = xpad_ref[:, dx:dx + W, :].reshape(
                    (TH + 2) * W, Cin)
                for dy in range(3):
                    patch = xflat_ref[dy * W:dy * W + TH * W, :]
                    upd = jnp.dot(patch, w_ref[dy * 3 + dx],
                                  preferred_element_type=jnp.float32)
                    if dx == 0 and dy == 0:
                        acc_ref[...] = upd
                    else:
                        acc_ref[...] += upd

        # ---- bias + ReLU epilogue; pooling happens on the bf16 values --------
        odt = o_ref.dtype if need_relu else p_ref.dtype
        y = jnp.maximum(acc_ref[...] + b_ref[...], 0.0).astype(odt)
        if need_relu:
            o_ref[0] = y.reshape(TH, W, Cout)
        if pool:                                   # fused MaxPool2d(2, 2)
            p = y.reshape(TH // 2, 2, W // 2, 2, Cout)
            p_ref[0] = jnp.max(jnp.max(p, axis=3), axis=1)

    return kernel


# --------------------------------------------------------------------------
# VMEM-aware tiling helpers
# --------------------------------------------------------------------------

def _vmem_capacity_bytes():
    try:
        return int(pltpu.get_tpu_info().vmem_capacity_bytes)
    except Exception:
        return 64 * 1024 * 1024            # conservative (v7x per-core VMEM)


def _vmem_limit_bytes():
    cap = _vmem_capacity_bytes()
    return max(16 * 1024 * 1024, min(int(0.85 * cap), cap - 8 * 1024 * 1024))


def _tile_budget_bytes():
    # Budget for the (now more complete) per-tile estimate; leaves margin for
    # anything the estimator still misses.
    return int(0.75 * _vmem_limit_bytes())


def _deep_k_threshold():
    """Cin threshold for dx-channel concatenation (K-deepening).

    256-deep MXU (v6e/v7x) profits up to Cin=128; a 128-deep MXU (v5e) only
    for Cin<=64.  Falls back to 128 when the MXU depth cannot be queried.
    """
    try:
        info = pltpu.get_tpu_info()
        depth = max(int(getattr(info, "mxu_contracting_size", 0) or 0),
                    int(getattr(info, "mxu_column_count", 0) or 0))
        if depth >= 256:
            return 128
        if depth > 0:
            return 64
    except Exception:
        pass
    return 128


def _conv_vmem_bytes(th, W, cin, cout, pool, need_relu, deep_k, n_in_buf):
    bpe = jnp.dtype(_COMPUTE_DTYPE).itemsize
    kc = 3 * cin if deep_k else cin
    in_b = n_in_buf * (th * W * cin + 2 * W * cin) * bpe          # x + halo
    out_b = 2 * ((th * W * cout * bpe if need_relu else 0)
                 + ((th // 2) * (W // 2) * cout * bpe if pool else 0))
    w_b = 2 * (9 * cin * cout * bpe + cout * 4)                   # 2 weight bufs
    scr_b = ((th + 2) * (W + 2) * cin * bpe                       # xpad scratch
             + (th + 2) * W * kc * bpe                            # xflat scratch
             + th * W * cout * 4)                                 # f32 accumulator
    tmp_b = (th * W * cout * 4                                    # dot-result temp
             + (th + 2) * W * kc * bpe                            # concat/reshape temp
             + th * W * cout * (4 + 2 * bpe))                     # epilogue temps
    return in_b + out_b + w_b + scr_b + tmp_b


def _choose_row_tile(N, H, W, cin, cout, pool, need_relu, deep_k, max_row_tile):
    budget = _tile_budget_bytes()
    cap = H if max_row_tile is None else max(1, min(H, int(max_row_tile)))
    divs = [d for d in range(cap, 0, -1)
            if H % d == 0 and (not pool or d % 2 == 0)]
    if not divs:
        divs = [d for d in range(H, 0, -1)
                if H % d == 0 and (not pool or d % 2 == 0)]
    assert divs and (not pool or divs[-1] % 2 == 0), \
        "MaxPool2d(2,2) fusion needs an even row tile"

    th = next((d for d in divs
               if _conv_vmem_bytes(d, W, cin, cout, pool, need_relu, deep_k, 2)
               <= budget), divs[-1])

    # v7x has 2 TensorCores that only split 'parallel' grid axes: make sure
    # there are at least 2 grid steps (no effect on single-TC v5e/v6e).
    if N * (H // th) < 2:
        smaller = [d for d in divs if d < th]
        if smaller:
            th = smaller[0]
    return th


def _build_halos(x, th):
    """halo[n, 2h] = row above tile h, halo[n, 2h+1] = row below tile h
    (zeros at the image borders).  Shape (N, 2*ht, W, C)."""
    N, H, W, C = x.shape
    ht = H // th
    zrow = jnp.zeros((N, 1, W, C), x.dtype)
    if ht == 1:
        top, bot = zrow, zrow
    else:
        top = jnp.concatenate([zrow, x[:, th - 1::th][:, :ht - 1]], axis=1)
        bot = jnp.concatenate([x[:, th::th], zrow], axis=1)
    halos = jnp.stack([top, bot], axis=2)          # (N, ht, 2, W, C)
    return halos.reshape(N, ht * 2, W, C)


def _input_spec(shape, index_map, deep_buffer):
    """x/halo input spec; optionally 3-deep pipelined (memory-bound layers)."""
    if deep_buffer and _HAS_BUFFERED:
        try:
            return pl.BlockSpec(shape, index_map, pipeline_mode=pl.Buffered(3))
        except TypeError:            # older BlockSpec without pipeline_mode
            pass
    return pl.BlockSpec(shape, index_map)


# --------------------------------------------------------------------------
# pallas_call wrapper
# --------------------------------------------------------------------------

def conv3x3_relu(x, w_k, b2, *, pool=False, need_relu=True, max_row_tile=None):
    """x: (N,H,W,Cin) bf16.
    w_k: (3, 3*Cin, Cout) bf16 (deep-K layout, [dy, dx*Cin+ci, co]) or
         (9, Cin, Cout) bf16 (per-tap layout, [dy*3+dx, ci, co]).
    b2: (1,Cout) f32.  Returns (relu_nhwc_or_None, pooled_nhwc_or_None)."""
    N, H, W, Cin = x.shape
    Cout = w_k.shape[-1]
    deep_k = (w_k.shape[0] == 3)
    assert w_k.shape[1] == (3 * Cin if deep_k else Cin)
    assert need_relu or pool
    if pool:
        assert H % 2 == 0 and W % 2 == 0, "MaxPool2d(2,2) needs even H and W"

    th = _choose_row_tile(N, H, W, Cin, Cout, pool, need_relu, deep_k,
                          max_row_tile)
    ht = H // th
    halos = _build_halos(x, th)

    # Deeper input buffering only for low-Cin (memory-bound) layers and only
    # when it still fits the VMEM budget (v7x has half the VMEM of v5e/v6e).
    use_buf3 = (deep_k and _HAS_BUFFERED and N * ht >= 3 and
                _conv_vmem_bytes(th, W, Cin, Cout, pool, need_relu, deep_k, 3)
                <= _tile_budget_bytes())

    in_specs = [
        _input_spec((1, th, W, Cin), lambda n, h: (n, h, 0, 0), use_buf3),
        _input_spec((1, 2, W, Cin), lambda n, h: (n, h, 0, 0), use_buf3),
        pl.BlockSpec(w_k.shape, lambda n, h: (0, 0, 0)),     # resident weights
        pl.BlockSpec((1, Cout), lambda n, h: (0, 0)),
    ]

    out_shapes, out_specs = [], []
    if need_relu:
        out_shapes.append(jax.ShapeDtypeStruct((N, H, W, Cout), x.dtype))
        out_specs.append(pl.BlockSpec((1, th, W, Cout),
                                      lambda n, h: (n, h, 0, 0)))
    if pool:
        out_shapes.append(jax.ShapeDtypeStruct((N, H // 2, W // 2, Cout),
                                               x.dtype))
        out_specs.append(pl.BlockSpec((1, th // 2, W // 2, Cout),
                                      lambda n, h: (n, h, 0, 0)))

    kc = 3 * Cin if deep_k else Cin
    scratch_shapes = [
        pltpu.VMEM((th + 2, W + 2, Cin), x.dtype),      # padded row band
        pltpu.VMEM(((th + 2) * W, kc), x.dtype),        # flattened patch buffer
        pltpu.VMEM((th * W, Cout), jnp.float32),        # MXU accumulator
    ]

    outs = pl.pallas_call(
        _make_conv_kernel(pool, need_relu, deep_k),
        out_shape=tuple(out_shapes),
        grid=(N, ht),
        in_specs=in_specs,
        out_specs=tuple(out_specs),
        scratch_shapes=scratch_shapes,
        compiler_params=pltpu.CompilerParams(
            dimension_semantics=("parallel", "parallel"),
            vmem_limit_bytes=_vmem_limit_bytes()),
    )(x, halos, w_k, b2)

    outs = list(outs) if isinstance(outs, (tuple, list)) else [outs]
    relu = outs.pop(0) if need_relu else None
    pooled = outs.pop(0) if pool else None
    return relu, pooled


# --------------------------------------------------------------------------
# Vgg19 feature model (mirrors torchvision vgg19().features indexing)
# --------------------------------------------------------------------------

_VGG19_CFG = [64, 64, 'M', 128, 128, 'M', 256, 256, 256, 256, 'M',
              512, 512, 512, 512, 'M', 512, 512, 512, 512, 'M']

# torchvision feature index of the ReLU following each named conv
_LAYER_NAMES = {1: 'conv1_1', 3: 'conv1_2', 6: 'conv2_1', 8: 'conv2_2',
                11: 'conv3_1', 13: 'conv3_2', 15: 'conv3_3', 17: 'conv3_4',
                20: 'conv4_1', 22: 'conv4_2', 24: 'conv4_3', 26: 'conv4_4',
                29: 'conv5_1', 31: 'conv5_2', 33: 'conv5_3', 35: 'conv5_4'}


class Vgg19Pallas:
    def __init__(self, layers_to_use, seed=0, max_row_tile=None,
                 features_to_return=None):
        assert layers_to_use, 'VGG LAYERS CANNOT BE EMPTY'
        self.max_row_tile = max_row_tile
        ret = None if features_to_return is None else set(features_to_return)

        # same truncation logic as the torch module
        last_layer = 0
        for layer_num, layer_name in _LAYER_NAMES.items():
            if layer_name == layers_to_use[-1]:
                last_layer = layer_num
        last_layer = int(last_layer) + 1

        # TODO(synk): pretrained torchvision weights cannot be loaded here;
        # parameters are deterministic synthetic values of the correct shapes.
        base_key = jax.random.PRNGKey(seed)
        raw = []                     # ('conv', idx, w, b) / ('pool', idx)
        idx, in_ch = 0, 3
        for v in _VGG19_CFG:
            if idx >= last_layer:
                break
            if v == 'M':
                raw.append(('pool', idx))
                idx += 1
            else:
                kw, kb = jax.random.split(jax.random.fold_in(base_key, idx))
                w = 0.05 * jax.random.normal(kw, (v, in_ch, 3, 3), jnp.float32)
                b = 0.01 * jax.random.normal(kb, (v,), jnp.float32)
                raw.append(('conv', idx, w, b))
                idx += 2             # conv + fused ReLU take two feature indices
                in_ch = v

        deep_k_thr = _deep_k_threshold()

        # Fuse each MaxPool into the preceding conv+ReLU kernel.
        self.convs = []
        i = 0
        while i < len(raw):
            _, cidx, w, b = raw[i]
            pool = (i + 1 < len(raw)) and raw[i + 1][0] == 'pool'
            cout, cin = w.shape[0], w.shape[1]
            name = _LAYER_NAMES.get(cidx + 1)
            recorded = (name is not None) and (ret is None or name in ret)
            need_relu = (not pool) or recorded
            deep_k = cin <= deep_k_thr
            # (Cout,Cin,kh,kw) -> (kh,kw,Cin,Cout); cross-correlation taps.
            w_hwio = jnp.transpose(w, (2, 3, 1, 0))
            if deep_k:
                w_kern = w_hwio.reshape(3, 3 * cin, cout)   # [dy, dx*Cin+ci, co]
            else:
                w_kern = w_hwio.reshape(9, cin, cout)       # [dy*3+dx, ci, co]
            self.convs.append(dict(
                name=name, recorded=recorded,
                w=w_kern.astype(_COMPUTE_DTYPE),
                b=b.reshape(1, cout).astype(jnp.float32),
                cin=cin, cout=cout, pool=pool,
                need_relu=need_relu, deep_k=deep_k))
            i += 2 if pool else 1

    def __call__(self, x_nchw):
        x = jnp.transpose(x_nchw, (0, 2, 3, 1)).astype(_COMPUTE_DTYPE)  # NHWC
        feats = {}
        for c in self.convs:
            relu, pooled = conv3x3_relu(
                x, c['w'], c['b'], pool=c['pool'], need_relu=c['need_relu'],
                max_row_tile=self.max_row_tile)
            if c['recorded']:
                feats[c['name']] = jnp.transpose(
                    relu, (0, 3, 1, 2)).astype(jnp.float32)
            x = pooled if c['pool'] else relu
        return feats


# --------------------------------------------------------------------------
# pure-JAX reference (same bf16 params / f32 accumulation) for checking
# --------------------------------------------------------------------------

def _reference(model, x_nchw):
    x = jnp.transpose(x_nchw, (0, 2, 3, 1)).astype(_COMPUTE_DTYPE)
    feats = {}
    for c in model.convs:
        cin, cout = c['cin'], c['cout']
        w_hwio = c['w'].reshape(3, 3, cin, cout)
        y = lax.conv_general_dilated(
            x, w_hwio, window_strides=(1, 1), padding='SAME',
            dimension_numbers=('NHWC', 'HWIO', 'NHWC'),
            preferred_element_type=jnp.float32)
        y = jnp.maximum(y + c['b'].reshape(1, 1, 1, cout), 0.0)
        relu = y.astype(_COMPUTE_DTYPE)
        if c['recorded']:
            feats[c['name']] = jnp.transpose(
                relu, (0, 3, 1, 2)).astype(jnp.float32)
        if c['pool']:
            N, H, W, C = relu.shape
            x = relu.reshape(N, H // 2, 2, W // 2, 2, C).max(axis=(2, 4))
        else:
            x = relu
    return feats


if __name__ == "__main__":
    key = jax.random.PRNGKey(0)
    x = jax.random.normal(key, (2, 3, 16, 16), jnp.float32)   # NCHW, like torch

    blk12 = ['conv1_1', 'conv1_2', 'conv2_1', 'conv2_2']
    configs = [
        # (layers_to_use, features_to_return, max_row_tile)
        (blk12 + ['conv3_1', 'conv3_2'], None, None),   # deep-K + per-tap paths,
                                                        # torch-exact feature set
        (blk12, None, 4),                               # multi-tile rows: halos,
                                                        # cross-tile pooling,
                                                        # Buffered(3) inputs
        (['conv1_1', 'conv2_2'], ['conv1_1', 'conv2_2'], None),
                                                        # pooled-only output path
    ]

    for layers_to_use, feats_ret, max_row_tile in configs:
        model = Vgg19Pallas(layers_to_use, max_row_tile=max_row_tile,
                            features_to_return=feats_ret)
        feats = model(x)
        jax.block_until_ready(feats)

        ref = _reference(model, x)
        expected = [c['name'] for c in model.convs if c['recorded']]
        assert set(feats.keys()) == set(expected), (sorted(feats), expected)
        for name in expected:
            assert feats[name].shape == ref[name].shape, name
            err = float(jnp.max(jnp.abs(feats[name] - ref[name])))
            assert jnp.allclose(feats[name], ref[name],
                                rtol=3e-2, atol=3e-2), (name, err)

    print("KERNEL_OK")
</pallas_src>

<mosaic_0001>
module attributes {stable_mosaic.version = 11 : i64} {
  func.func @kernel(%arg0: i32, %arg1: i32, %arg2: memref<1x16x16x3xbf16, #tpu.memory_space<vmem>>, %arg3: memref<1x2x16x3xbf16, #tpu.memory_space<vmem>>, %arg4: memref<3x9x64xbf16, #tpu.memory_space<vmem>>, %arg5: memref<1x64xf32, #tpu.memory_space<vmem>>, %arg6: memref<1x16x16x64xbf16, #tpu.memory_space<vmem>>, %arg7: memref<18x18x3xbf16, #tpu.memory_space<vmem>>, %arg8: memref<288x9xbf16, #tpu.memory_space<vmem>>, %arg9: memref<256x64xf32, #tpu.memory_space<vmem>>) attributes {dimension_semantics = [#tpu.dimension_semantics<parallel>, #tpu.dimension_semantics<parallel>], iteration_bounds = array<i64: 2, 1>, scalar_prefetch = 0 : i64, scratch_operands = 3 : i64, tpu.core_type = #tpu.core_type<tc>, window_params = [{transform_indices = @transform_0, window_bounds = array<i64: 1, 16, 16, 3>}, {transform_indices = @transform_1, window_bounds = array<i64: 1, 2, 16, 3>}, {pipeline_mode = #tpu.pipeline_mode<synchronous>, transform_indices = @transform_2, window_bounds = array<i64: 3, 9, 64>}, {pipeline_mode = #tpu.pipeline_mode<synchronous>, transform_indices = @transform_3, window_bounds = array<i64: 1, 64>}, {transform_indices = @transform_4, window_bounds = array<i64: 1, 16, 16, 64>}]} {
    %cst = arith.constant 0.000000e+00 : bf16
    %0 = vector.broadcast %cst : bf16 to vector<18x1x3xbf16>
    %c0 = arith.constant 0 : index
    %c0_0 = arith.constant 0 : index
    %c0_1 = arith.constant 0 : index
    %1 = vector.load %arg7[%c0, %c0_0, %c0_1] : memref<18x18x3xbf16, #tpu.memory_space<vmem>>, vector<18x1x3xbf16>
    tpu.vector_store %arg7[%c0, %c0_0, %c0_1], %0 {strides = array<i32>} : memref<18x18x3xbf16, #tpu.memory_space<vmem>>, vector<18x1x3xbf16>,
    %c0_2 = arith.constant 0 : index
    %c17 = arith.constant 17 : index
    %c0_3 = arith.constant 0 : index
    %2 = vector.load %arg7[%c0_2, %c17, %c0_3] : memref<18x18x3xbf16, #tpu.memory_space<vmem>>, vector<18x1x3xbf16>
    tpu.vector_store %arg7[%c0_2, %c17, %c0_3], %0 {strides = array<i32>} : memref<18x18x3xbf16, #tpu.memory_space<vmem>>, vector<18x1x3xbf16>,
    %c0_4 = arith.constant 0 : index
    %c0_5 = arith.constant 0 : index
    %c0_6 = arith.constant 0 : index
    %c0_7 = arith.constant 0 : index
    %3 = vector.load %arg3[%c0_4, %c0_5, %c0_6, %c0_7] : memref<1x2x16x3xbf16, #tpu.memory_space<vmem>>, vector<1x1x16x3xbf16>
    %4 = vector.shape_cast %3 : vector<1x1x16x3xbf16> to vector<1x16x3xbf16>
    %c0_8 = arith.constant 0 : index
    %c1 = arith.constant 1 : index
    %c0_9 = arith.constant 0 : index
    %5 = vector.load %arg7[%c0_8, %c1, %c0_9] : memref<18x18x3xbf16, #tpu.memory_space<vmem>>, vector<1x16x3xbf16>
    tpu.vector_store %arg7[%c0_8, %c1, %c0_9], %4 {strides = array<i32>} : memref<18x18x3xbf16, #tpu.memory_space<vmem>>, vector<1x16x3xbf16>,
    %c0_10 = arith.constant 0 : index
    %c0_11 = arith.constant 0 : index
    %c0_12 = arith.constant 0 : index
    %c0_13 = arith.constant 0 : index
    %6 = vector.load %arg2[%c0_10, %c0_11, %c0_12, %c0_13] : memref<1x16x16x3xbf16, #tpu.memory_space<vmem>>, vector<1x16x16x3xbf16>
    %7 = vector.shape_cast %6 : vector<1x16x16x3xbf16> to vector<16x16x3xbf16>
    %c1_14 = arith.constant 1 : index
    %c1_15 = arith.constant 1 : index
    %c0_16 = arith.constant 0 : index
    %8 = vector.load %arg7[%c1_14, %c1_15, %c0_16] : memref<18x18x3xbf16, #tpu.memory_space<vmem>>, vector<16x16x3xbf16>
    tpu.vector_store %arg7[%c1_14, %c1_15, %c0_16], %7 {strides = array<i32>} : memref<18x18x3xbf16, #tpu.memory_space<vmem>>, vector<16x16x3xbf16>,
    %c0_17 = arith.constant 0 : index
    %c1_18 = arith.constant 1 : index
    %c0_19 = arith.constant 0 : index
    %c0_20 = arith.constant 0 : index
    %9 = vector.load %arg3[%c0_17, %c1_18, %c0_19, %c0_20] : memref<1x2x16x3xbf16, #tpu.memory_space<vmem>>, vector<1x1x16x3xbf16>
    %10 = vector.shape_cast %9 : vector<1x1x16x3xbf16> to vector<1x16x3xbf16>
    %c17_21 = arith.constant 17 : index
    %c1_22 = arith.constant 1 : index
    %c0_23 = arith.constant 0 : index
    %11 = vector.load %arg7[%c17_21, %c1_22, %c0_23] : memref<18x18x3xbf16, #tpu.memory_space<vmem>>, vector<1x16x3xbf16>
    tpu.vector_store %arg7[%c17_21, %c1_22, %c0_23], %10 {strides = array<i32>} : memref<18x18x3xbf16, #tpu.memory_space<vmem>>, vector<1x16x3xbf16>,
    %c0_24 = arith.constant 0 : index
    %c0_25 = arith.constant 0 : index
    %c0_26 = arith.constant 0 : index
    %12 = vector.load %arg7[%c0_24, %c0_25, %c0_26] : memref<18x18x3xbf16, #tpu.memory_space<vmem>>, vector<18x16x3xbf16>
    %c0_27 = arith.constant 0 : index
    %c1_28 = arith.constant 1 : index
    %c0_29 = arith.constant 0 : index
    %13 = vector.load %arg7[%c0_27, %c1_28, %c0_29] : memref<18x18x3xbf16, #tpu.memory_space<vmem>>, vector<18x16x3xbf16>
    %c0_30 = arith.constant 0 : index
    %c2 = arith.constant 2 : index
    %c0_31 = arith.constant 0 : index
    %14 = vector.load %arg7[%c0_30, %c2, %c0_31] : memref<18x18x3xbf16, #tpu.memory_space<vmem>>, vector<18x16x3xbf16>
    %15 = tpu.concatenate %12, %13, %14 in 2 : vector<18x16x3xbf16>, vector<18x16x3xbf16>, vector<18x16x3xbf16> -> vector<18x16x9xbf16>
    %16 = vector.shape_cast %15 : vector<18x16x9xbf16> to vector<288x9xbf16>
    %c0_32 = arith.constant 0 : index
    %c0_33 = arith.constant 0 : index
    %17 = vector.load %arg8[%c0_32, %c0_33] : memref<288x9xbf16, #tpu.memory_space<vmem>>, vector<288x9xbf16>
    tpu.vector_store %arg8[%c0_32, %c0_33], %16 {strides = array<i32>} : memref<288x9xbf16, #tpu.memory_space<vmem>>, vector<288x9xbf16>,
    %c0_34 = arith.constant 0 : index
    %c0_35 = arith.constant 0 : index
    %18 = vector.load %arg8[%c0_34, %c0_35] : memref<288x9xbf16, #tpu.memory_space<vmem>>, vector<256x9xbf16>
    %c0_36 = arith.constant 0 : index
    %c0_37 = arith.constant 0 : index
    %c0_38 = arith.constant 0 : index
    %19 = vector.load %arg4[%c0_36, %c0_37, %c0_38] : memref<3x9x64xbf16, #tpu.memory_space<vmem>>, vector<1x9x64xbf16>
    %20 = vector.shape_cast %19 : vector<1x9x64xbf16> to vector<9x64xbf16>
    %cst_39 = arith.constant dense<0.000000e+00> : vector<256x64xf32>
    %21 = tpu.matmul %18, %20, %cst_39 {dimension_numbers = #tpu.dot_dimension_numbers<[1], [0], [0], [1], [0, 0, 1, 1], [], []>} : vector<256x9xbf16>, vector<9x64xbf16>, vector<256x64xf32> -> vector<256x64xf32>
    %c0_40 = arith.constant 0 : index
    %c0_41 = arith.constant 0 : index
    %22 = vector.load %arg9[%c0_40, %c0_41] : memref<256x64xf32, #tpu.memory_space<vmem>>, vector<256x64xf32>
    tpu.vector_store %arg9[%c0_40, %c0_41], %21 {strides = array<i32>} : memref<256x64xf32, #tpu.memory_space<vmem>>, vector<256x64xf32>,
    %c16 = arith.constant 16 : index
    %c0_42 = arith.constant 0 : index
    %23 = vector.load %arg8[%c16, %c0_42] : memref<288x9xbf16, #tpu.memory_space<vmem>>, vector<256x9xbf16>
    %c1_43 = arith.constant 1 : index
    %c0_44 = arith.constant 0 : index
    %c0_45 = arith.constant 0 : index
    %24 = vector.load %arg4[%c1_43, %c0_44, %c0_45] : memref<3x9x64xbf16, #tpu.memory_space<vmem>>, vector<1x9x64xbf16>
    %25 = vector.shape_cast %24 : vector<1x9x64xbf16> to vector<9x64xbf16>
    %cst_46 = arith.constant dense<0.000000e+00> : vector<256x64xf32>
    %26 = tpu.matmul %23, %25, %cst_46 {dimension_numbers = #tpu.dot_dimension_numbers<[1], [0], [0], [1], [0, 0, 1, 1], [], []>} : vector<256x9xbf16>, vector<9x64xbf16>, vector<256x64xf32> -> vector<256x64xf32>
    %c0_47 = arith.constant 0 : index
    %c0_48 = arith.constant 0 : index
    %27 = vector.load %arg9[%c0_47, %c0_48] : memref<256x64xf32, #tpu.memory_space<vmem>>, vector<256x64xf32>
    %28 = arith.addf %27, %26 : vector<256x64xf32>
    %c0_49 = arith.constant 0 : index
    %c0_50 = arith.constant 0 : index
    %29 = vector.load %arg9[%c0_49, %c0_50] : memref<256x64xf32, #tpu.memory_space<vmem>>, vector<256x64xf32>
    tpu.vector_store %arg9[%c0_49, %c0_50], %28 {strides = array<i32>} : memref<256x64xf32, #tpu.memory_space<vmem>>, vector<256x64xf32>,
    %c32 = arith.constant 32 : index
    %c0_51 = arith.constant 0 : index
    %30 = vector.load %arg8[%c32, %c0_51] : memref<288x9xbf16, #tpu.memory_space<vmem>>, vector<256x9xbf16>
    %c2_52 = arith.constant 2 : index
    %c0_53 = arith.constant 0 : index
    %c0_54 = arith.constant 0 : index
    %31 = vector.load %arg4[%c2_52, %c0_53, %c0_54] : memref<3x9x64xbf16, #tpu.memory_space<vmem>>, vector<1x9x64xbf16>
    %32 = vector.shape_cast %31 : vector<1x9x64xbf16> to vector<9x64xbf16>
    %cst_55 = arith.constant dense<0.000000e+00> : vector<256x64xf32>
    %33 = tpu.matmul %30, %32, %cst_55 {dimension_numbers = #tpu.dot_dimension_numbers<[1], [0], [0], [1], [0, 0, 1, 1], [], []>} : vector<256x9xbf16>, vector<9x64xbf16>, vector<256x64xf32> -> vector<256x64xf32>
    %c0_56 = arith.constant 0 : index
    %c0_57 = arith.constant 0 : index
    %34 = vector.load %arg9[%c0_56, %c0_57] : memref<256x64xf32, #tpu.memory_space<vmem>>, vector<256x64xf32>
    %35 = arith.addf %34, %33 : vector<256x64xf32>
    %c0_58 = arith.constant 0 : index
    %c0_59 = arith.constant 0 : index
    %36 = vector.load %arg9[%c0_58, %c0_59] : memref<256x64xf32, #tpu.memory_space<vmem>>, vector<256x64xf32>
    tpu.vector_store %arg9[%c0_58, %c0_59], %35 {strides = array<i32>} : memref<256x64xf32, #tpu.memory_space<vmem>>, vector<256x64xf32>,
    %c0_60 = arith.constant 0 : index
    %c0_61 = arith.constant 0 : index
    %37 = vector.load %arg9[%c0_60, %c0_61] : memref<256x64xf32, #tpu.memory_space<vmem>>, vector<256x64xf32>
    %c0_62 = arith.constant 0 : index
    %c0_63 = arith.constant 0 : index
    %38 = vector.load %arg5[%c0_62, %c0_63] : memref<1x64xf32, #tpu.memory_space<vmem>>, vector<1x64xf32>
    %39 = vector.broadcast %38 : vector<1x64xf32> to vector<256x64xf32>
    %40 = arith.addf %37, %39 : vector<256x64xf32>
    %cst_64 = arith.constant 0.000000e+00 : f32
    %41 = vector.broadcast %cst_64 : f32 to vector<256x64xf32>
    %42 = arith.maximumf %40, %41 : vector<256x64xf32>
    %43 = arith.truncf %42 : vector<256x64xf32> to vector<256x64xbf16>
    %44 = vector.shape_cast %43 : vector<256x64xbf16> to vector<16x16x64xbf16>
    %c0_65 = arith.constant 0 : index
    %c0_66 = arith.constant 0 : index
    %c0_67 = arith.constant 0 : index
    %c0_68 = arith.constant 0 : index
    %45 = vector.load %arg6[%c0_65, %c0_66, %c0_67, %c0_68] : memref<1x16x16x64xbf16, #tpu.memory_space<vmem>>, vector<1x16x16x64xbf16>
    %46 = vector.shape_cast %45 : vector<1x16x16x64xbf16> to vector<16x16x64xbf16>
    %47 = vector.shape_cast %44 : vector<16x16x64xbf16> to vector<1x16x16x64xbf16>
    tpu.vector_store %arg6[%c0_65, %c0_66, %c0_67, %c0_68], %47 {strides = array<i32>} : memref<1x16x16x64xbf16, #tpu.memory_space<vmem>>, vector<1x16x16x64xbf16>,
    return
  }
  func.func @transform_0(%arg0: i32, %arg1: i32) -> (i32, i32, i32, i32) {
    %c0_i32 = arith.constant 0 : i32
    %c0_i32_0 = arith.constant 0 : i32
    %c0_i32_1 = arith.constant 0 : i32
    return %arg0, %arg1, %c0_i32, %c0_i32_0 : i32, i32, i32, i32
  }
  func.func @transform_1(%arg0: i32, %arg1: i32) -> (i32, i32, i32, i32) {
    %c0_i32 = arith.constant 0 : i32
    %c0_i32_0 = arith.constant 0 : i32
    %c0_i32_1 = arith.constant 0 : i32
    return %arg0, %arg1, %c0_i32, %c0_i32_0 : i32, i32, i32, i32
  }
  func.func @transform_2(%arg0: i32, %arg1: i32) -> (i32, i32, i32) {
    %c0_i32 = arith.constant 0 : i32
    %c0_i32_0 = arith.constant 0 : i32
    %c0_i32_1 = arith.constant 0 : i32
    %c0_i32_2 = arith.constant 0 : i32
    return %c0_i32, %c0_i32_0, %c0_i32_1 : i32, i32, i32
  }
  func.func @transform_3(%arg0: i32, %arg1: i32) -> (i32, i32) {
    %c0_i32 = arith.constant 0 : i32
    %c0_i32_0 = arith.constant 0 : i32
    %c0_i32_1 = arith.constant 0 : i32
    return %c0_i32, %c0_i32_0 : i32, i32
  }
  func.func @transform_4(%arg0: i32, %arg1: i32) -> (i32, i32, i32, i32) {
    %c0_i32 = arith.constant 0 : i32
    %c0_i32_0 = arith.constant 0 : i32
    %c0_i32_1 = arith.constant 0 : i32
    return %arg0, %arg1, %c0_i32, %c0_i32_0 : i32, i32, i32, i32
  }
}

</mosaic_0001>

<bundles_post_ra>
// kernel: tpu_custom_call.1
= control target key start
LH: loop header
LB: loop body
LE: loop exit
PB: predicated region body
PF: predicated region fallthrough
CT: control target
= control target key end

     0   :  { %9 = vsyncpa [#allocation6], 0  ;;  %s4543_s0 = inlined_call_operand.vmem [shape: bf16[2,16,16,3], index: 0, kind: input, shape index: {}]   ;;  %s4544_s1 = inlined_call_operand.vmem [shape: bf16[2,2,16,3], index: 1, kind: input, shape index: {}]   ;;  %s4545_s2 = inlined_call_operand.vmem [shape: bf16[3,9,64], index: 2, kind: input, shape index: {}]   ;;  %s4546_s3 = inlined_call_operand.vmem [shape: f32[1,64], index: 3, kind: input, shape index: {}]   ;;  %s4547_s4 = inlined_call_operand.hbm [shape: bf16[2,16,16,64], index: 4, kind: output, shape index: {}]  }
   0x1   :  { %11 = vsyncpa [#allocation6 + $0x1], 0  ;;  %s3664_s15 = smov 0   ;;  %s3666_s16 = smov 0  }
   0x2   :  { %s3668_s17 = smov 0   ;;  %s3670_s18 = smov 0  }
   0x3   :  { %s3672_s19 = smov 0   ;;  %s3674_s20 = smov 0  }
   0x4 LB: > { %s3060_s21 = sadd.s32 4294967295, %s3632_s20   ;;  %s3061_s22 = sadd.s32 4294967294, %s3632_s20   ;;  %s3632_s20 = sphi %s3674_s20, %s17_s20   ;;  %s3628_s19 = sphi %s3672_s19, %s4562_s19   ;;  %s3624_s18 = sphi %s3670_s18, %s4561_s18   ;;  %s3620_s17 = sphi %s3668_s17, %s4560_s17   ;;  %s3616_s16 = sphi %s3666_s16, %s4559_s16   ;;  %s3612_s15 = sphi %s3664_s15, %s4558_s15  }
   0x5   : > { %s29_s23 = sadd.s32 1, %s3628_s19  ;;  %s136_s24 = sadd.s32 1, %s3620_s17 }
   0x6   : > { %p31_p0 = scmp.ge.s32.totalorder %s29_s23, 2  ;;  %p146_p1 = scmp.ne.s32.totalorder %s3620_s17, %s3616_s16 }
   0x7   : > { %p147_p2 = scmp.eq.s32.totalorder %s3060_s21, 1  ;;  %p152_p3 = scmp.ne.s32.totalorder %s3616_s16, %s3612_s15 }
   0x8   : > { %s4564_s23 = smov (%p31_p0, %s29_s23), 0  ;;  %p153_p5 = scmp.eq.s32.totalorder %s3061_s22, 1 }
   0x9   : > { %p3704_p4 = por %p147_p2, %p146_p1  ;;  %s131_s26 = ssub.s32 %s3628_s19, %s4564_s23 }
   0xa   : > { %p3064_p6 = scmp.ge.s32.totalorder %s3632_s20, 1  ;;  %p134_p7 = scmp.eq.s32.totalorder %s131_s26, 0 }
   0xb   : > { %p3711_p8 = por %p153_p5, %p152_p3  ;;  %p205_p9 = scmp.lt.s32.totalorder %s3632_s20, 3 }
   0xc   : > { %s3717_s28 = scalar_select %p134_p7, %s3620_s17, %s136_s24  }
   0xd   : > { %p206_p10 = pnand %p3064_p6, %p205_p9 }
   0xe   : > { %p247_p11 = scmp.lt.s32.totalorder (!%p206_p10), %s3624_s18, 1  ;;  %s3634_s12 = smov (!%p206_p10), 6  }
   0xf   : > { %209 = sbr.rel (%p206_p10) target bundleno = 544 (0x220), region = 36  ;;  %s3635_s13 = smov (!%p206_p10), 3  }
  0x10   : > { %s3386_s21 = sshll.u32 (!%p206_p10), %s3624_s18, 7  ;;  %s3568_s10 = scalar_lea.hbm (!%p206_p10), %s4547_s4, 256 }
  0x11   : > { %s2953_s26 = scalar_lea.hbm (!%p206_p10), %s4547_s4, %s3386_s21 }
  0x14   : > { %vm270_vm0 = vcmask 16384   ;;  %vm271_vm1 = vsmask.f32 256  ;;  %v276_v0 = vld [vmem:[#allocation2 + $0xc] sm:$0x1]  ;;  %s248_s29 = scalar_select %p247_p11, %s3624_s18, 1 }
  0x15   : > { %vm3721_vm2 = vmand %vm270_vm0, %vm271_vm1  ;;  %vm327_vm3 = vsmask.f32 7938  ;;  %v332_v2 = vld [vmem:[#allocation2 + $0x14] sm:$0x1]  ;;  %v273_v5 = vld [vmem:[#allocation2] sm:$0x1] }
  0x16   : > { %v277_v3 = vsel %vm3721_vm2, 0, %v276_v0  ;;  %vm3729_vm4 = vmand %vm270_vm0, %vm327_vm3  ;;  %v274_v7 = vsel %vm3721_vm2, 0, %v273_v5  ;;  %s3333_s30 = sshll.u32 %s248_s29, 7  ;;  %s3334_s5 = sshll.u32 %s248_s29, 4  ;;  %v329_v8 = vld [vmem:[#allocation2 + $0x8] sm:$0x1] }
  0x17   : > { %278 = vst [vmem:[#allocation2 + $0xc] sm:$0x1] %v277_v3  ;;  %v333_v6 = vsel %vm3729_vm4, 0, %v332_v2  ;;  %s3740_s8 = scalar_lea.vmem %s4543_s0, %s3333_s30  ;;  %vm385_vm5 = vsmask.f32 4368  ;;  %vm407_vm6 = vcmask 19456   ;;  %s3745_s11 = scalar_lea.vmem %s4544_s1, %s3334_s5 }
  0x18   : > { %334 = vst [vmem:[#allocation2 + $0x14] sm:$0x1] %v333_v6  ;;  %v330_v9 = vsel %vm3729_vm4, 0, %v329_v8  ;;  %v417_v10 = vld [vmem:[%s3740_s8] sm:$0xf]  ;;  %vm3755_vm7 = vmor %vm271_vm1, %vm385_vm5  ;;  %vm1436_vm9 = vcmask 1046528  }
  0x19   : > { %275 = vst [vmem:[#allocation2] sm:$0x1] %v274_v7  ;;  %v418_v11 = vld [vmem:[%s3740_s8 + $0x4] sm:$0xf]  ;;  %v450_v12 = vshrl.u32 %v417_v10, 16  ;;  %v453_v13 = vshll.u32 %v417_v10, 16  ;;  %vm3761_vm8 = vmand %vm407_vm6, %vm327_vm3 }
  0x1a   : > { %331 = vst [vmem:[#allocation2 + $0x8] sm:$0x1] %v330_v9  ;;  %v458_v14 = vshrl.u32 %v418_v11, 16  ;;  %v461_v15 = vshll.u32 %v418_v11, 16  ;;  %v383_v16 = vld [vmem:[%s3745_s11] sm:$0xf] }
  0x1b   : > { %v384_v17 = vld [vmem:[%s3745_s11 + $0x4] sm:$0xf]  ;;  %v388_v18 = vshrl.u32 %v383_v16, 16  ;;  %v391_v19 = vshll.u32 %v383_v16, 16  ;;  %v309_v20 = vld [vmem:[#allocation2 + $0x90] sm:$0x1] }
  0x1c   : > { %v452_v22 = vrot.slane %v450_v12, 7  ;;  %v460_v23 = vrot.slane %v458_v14, 7  ;;  %v396_v24 = vshrl.u32 %v384_v17, 16  ;;  %v365_v25 = vld [vmem:[#allocation2 + $0x98] sm:$0x1]  ;;  %v399_v29 = vshll.u32 %v384_v17, 16 }
  0x1d   : > { %v390_v28 = vrot.slane %v388_v18, 7  ;;  %v310_v30 = vsel %vm3721_vm2, 0, %v309_v20  ;;  %v366_v31 = vsel %vm3729_vm4, 0, %v365_v25  ;;  %v439_v45 = vld [vmem:[%s3740_s8 + $0x58] sm:$0xf]  ;;  %vm1932_vm11 = vcmask 1043456  }
  0x1e   : > { %v770_v27 = vld [vmem:[#allocation2 + $0xc] sm:$0xf]  ;;  %v455_v32 = vor.u32 %v453_v13, %v452_v22  ;;  %v456_v33 = vrot.slane %v452_v22, 4  ;;  %v463_v34 = vor.u32 %v461_v15, %v460_v23  ;;  %v465_v35 = vrot.slane %v460_v23, 4  ;;  %311 = vst [vmem:[#allocation2 + $0x90] sm:$0x1] %v310_v30 }
  0x1f   : > { %v774_v36 = vld [vmem:[#allocation2 + $0x14] sm:$0x1]  ;;  %v393_v37 = vor.u32 %v391_v19, %v390_v28  ;;  %v394_v38 = vrot.slane %v390_v28, 4  ;;  %v398_v39 = vrot.slane %v396_v24, 7  ;;  %367 = vst [vmem:[#allocation2 + $0x98] sm:$0x1] %v366_v31 }
  0x20   : > { %v409_v40 = vld [vmem:[#allocation2] sm:$0xf]  ;;  %v464_v41 = vsel %vm3755_vm7, %v456_v33, %v463_v34  ;;  %v771_v42 = vsel %vm3761_vm8, %v455_v32, %v770_v27  ;;  %v775_v43 = vsel %vm3721_vm2, %v465_v35, %v774_v36  ;;  %v440_v46 = vld [vmem:[%s3740_s8 + $0x5c] sm:$0xf]  ;;  %v637_v50 = vshrl.u32 %v439_v45, 16  ;;  %s2956_s30 = sshll.u32 %s2953_s26, 4  ;;  %s2957_s30 = int_to_ptr.hbm [resolvable:$true] %s2956_s30 }
  0x21   : > { %v414_v44 = vld [vmem:[#allocation2 + $0x8] sm:$0x1]  ;;  %772 = vst [vmem:[#allocation2 + $0xc] sm:$0xf] %v771_v42  ;;  %v401_v47 = vor.u32 %v399_v29, %v398_v39  ;;  %v403_v48 = vrot.slane %v398_v39, 4  ;;  %v410_v49 = vsel %vm3761_vm8, %v393_v37, %v409_v40  ;;  %v640_v52 = vshll.u32 %v439_v45, 16 }
  0x22   : > { %v279_v51 = vld [vmem:[#allocation2 + $0x18] sm:$0x1]  ;;  %773 = vst.msk [vmem:[#allocation2 + $0x10] sm:$0xf] %vm407_vm6, %v464_v41  ;;  %v645_v53 = vshrl.u32 %v440_v46, 16  ;;  %v648_v54 = vshll.u32 %v440_v46, 16 }
  0x23   : > { %776 = vst [vmem:[#allocation2 + $0x14] sm:$0x1] %v775_v43  ;;  %v402_v55 = vsel %vm3755_vm7, %v394_v38, %v401_v47  ;;  %v415_v56 = vsel %vm3721_vm2, %v403_v48, %v414_v44  ;;  %v639_v57 = vrot.slane %v637_v50, 7  ;;  %v335_v58 = vld [vmem:[#allocation2 + $0x20] sm:$0x1]  ;;  %v280_v60 = vsel %vm3721_vm2, 0, %v279_v51 }
  0x24   : > { %411 = vst [vmem:[#allocation2] sm:$0xf] %v410_v49  ;;  %v647_v59 = vrot.slane %v645_v53, 7  ;;  %v419_v61 = vld [vmem:[%s3740_s8 + $0x8] sm:$0xf]  ;;  %v336_v7 = vsel %vm3729_vm4, 0, %v335_v58 }
  0x25   : > { %413 = vst.msk [vmem:[#allocation2 + $0x4] sm:$0xf] %vm407_vm6, %v402_v55  ;;  %v642_v62 = vor.u32 %v640_v52, %v639_v57  ;;  %v643_v63 = vrot.slane %v639_v57, 4  ;;  %v847_v0 = vld [vmem:[#allocation2 + $0x90] sm:$0xf]  ;;  %v467_v2 = vshrl.u32 %v419_v61, 16 }
  0x26   : > { %416 = vst [vmem:[#allocation2 + $0x8] sm:$0x1] %v415_v56  ;;  %v650_v3 = vor.u32 %v648_v54, %v647_v59  ;;  %v652_v5 = vrot.slane %v647_v59, 4  ;;  %v851_v6 = vld [vmem:[#allocation2 + $0x98] sm:$0x1]  ;;  %v470_v11 = vshll.u32 %v419_v61, 16 }
  0x27   : > { %v848_v8 = vsel %vm3761_vm8, %v642_v62, %v847_v0  ;;  %281 = vst [vmem:[#allocation2 + $0x18] sm:$0x1] %v280_v60  ;;  %v420_v9 = vld [vmem:[%s3740_s8 + $0xc] sm:$0xf]  ;;  %v469_v10 = vrot.slane %v467_v2, 7  ;;  %vm1933_vm12 = vcmask 1044480  }
  0x28   : > { %v3605_v12 = vld [vmem:[#allocation2 + $0xc] sm:$0xe]  ;;  %v651_v13 = vsel %vm3755_vm7, %v643_v63, %v650_v3  ;;  %849 = vst [vmem:[#allocation2 + $0x90] sm:$0xf] %v848_v8  ;;  %v852_v14 = vsel %vm3721_vm2, %v652_v5, %v851_v6  ;;  %v475_v15 = vshrl.u32 %v420_v9, 16  ;;  %v478_v16 = vshll.u32 %v420_v9, 16 }
  0x29   : > { %v3797_v17 = vld [vmem:[#allocation2 + $0xc] sm:$0xff]   ;;  %850 = vst.msk [vmem:[#allocation2 + $0x94] sm:$0xf] %vm407_vm6, %v651_v13  ;;  %v312_v19 = vld [vmem:[#allocation2 + $0x9c] sm:$0x1]  ;;  %v472_v27 = vor.u32 %v470_v11, %v469_v10  ;;  %v473_v28 = vrot.slane %v469_v10, 4 }
  0x2a   : > { %v3604_v18 = vld [vmem:[#allocation2 + $0xc] sm:$0xf0]  ;;  %v950_v20 = vld [vmem:[#allocation2 + $0x14] sm:$0x1]  ;;  %853 = vst [vmem:[#allocation2 + $0x98] sm:$0x1] %v852_v14 }
  0x2b   : > { %v477_v22 = vrot.slane %v475_v15, 7  ;;  %v313_v23 = vsel %vm3721_vm2, 0, %v312_v19  ;;  %v1094_v24 = vunpack.c.l.b16 %v950_v20  ;;  %vm1129_vm10 = vsmask.f32 7424  ;;  %v3432_v25 = vld [vmem:[#allocation2] sm:$0xe] }
  0x2c   : > { %337 = vst [vmem:[#allocation2 + $0x20] sm:$0x1] %v336_v7  ;;  %v3606_v29 = vor.u32 %v3605_v12, %v3604_v18  ;;  %v3388_v30 = vld [vmem:[#allocation2] sm:$0xff]   ;;  %v1143_v41 = vshrl.u32 %v3797_v17, 16  ;;  %v1145_v42 = vshll.u32 %v3797_v17, 16  ;;  %vm1564_vm13 = vcmask 48128  }
  0x2d   : > { %v3431_v31 = vld [vmem:[#allocation2] sm:$0xf0]  ;;  %v480_v32 = vor.u32 %v478_v16, %v477_v22  ;;  %v482_v33 = vrot.slane %v477_v22, 4  ;;  %314 = vst [vmem:[#allocation2 + $0x9c] sm:$0x1] %v313_v23  ;;  %v1112_v34 = vpack.c.b16 %v1094_v24, %v1094_v24  ;;  %v1131_v36 = vshrl.u32 %v3388_v30, 16 }
  0x2e   : > { %v949_v35 = vld [vmem:[#allocation2 + $0x8] sm:$0x1]  ;;  %v1133_v37 = vshll.u32 %v3388_v30, 16  ;;  %v3433_v38 = vor.u32 %v3432_v25, %v3431_v31  ;;  %v1440_v39 = vrot.slane %v3606_v29, 1  ;;  %v777_v43 = vld [vmem:[#allocation2 + $0x18] sm:$0xf] }
  0x2f   : > { %v1093_v40 = vunpack.c.l.b16 %v949_v35  ;;  %v368_v44 = vld [vmem:[#allocation2 + $0xa4] sm:$0x1]  ;;  %v1441_v45 = vrot.slane %v1112_v34, 1  ;;  %v1150_v47 = vshll.u32 %v1112_v34, 16  ;;  %v3450_v49 = vld [vmem:[#allocation2 + $0x90] sm:$0xe]  ;;  %v481_v53 = vsel %vm3755_vm7, %v473_v28, %v480_v32 }
  0x30   : > { %v1135_v46 = vrot.slane %v1133_v37, 1  ;;  %v1437_v48 = vrot.slane %v3433_v38, 1  ;;  %v1147_v51 = vrot.slane %v1145_v42, 1  ;;  %v3449_v52 = vld [vmem:[#allocation2 + $0x90] sm:$0xf0]  ;;  %v778_v54 = vsel %vm3761_vm8, %v472_v27, %v777_v43  ;;  %s3562_s5 = sshra.s32 %s2957_s30, 4  ;;  %s3563_s5 = int_to_ptr.hbm [resolvable:$true] %s3562_s5 }
  0x31   : > { %v1111_v50 = vpack.c.b16 %v1093_v40, %v1093_v40  ;;  %v441_v55 = vld [vmem:[%s3740_s8 + $0x60] sm:$0xf]  ;;  %v1442_v56 = vsel %vm1436_vm9, %v1440_v39, %v1441_v45  ;;  %v961_v58 = vld [vmem:[#allocation2 + $0x98] sm:$0x1]  ;;  %v3451_v59 = vor.u32 %v3450_v49, %v3449_v52  ;;  %779 = vst [vmem:[#allocation2 + $0x18] sm:$0xf] %v778_v54  ;;  %p3569_p1 = scmp.lt.s32.totalorder %s3563_s5, %s4547_s4 }
  0x32   : > { %v1136_v57 = vor.u32 %v1135_v46, %v1131_v36  ;;  %v442_v60 = vld [vmem:[%s3740_s8 + $0x64] sm:$0xf]  ;;  %1493 = vrot.lane.b32.xlu1 %v1442_v56, %s3634_s12  ;;  %v1148_v62 = vor.u32 %v1147_v51, %v1143_v41  ;;  %v1152_v63 = vrot.slane %v1150_v47, 1  ;;  %v1105_v0 = vunpack.c.l.b16 %v961_v58  ;;  %780 = vst.msk [vmem:[#allocation2 + $0x1c] sm:$0xf] %vm407_vm6, %v481_v53  ;;  %s3564_s6 = scalar_lea.hbm %s3563_s5, 128 }
  0x33   : > { %v1138_v61 = vshll.u32 %v1111_v50, 16  ;;  %v781_v2 = vld [vmem:[#allocation2 + $0x20] sm:$0x1]  ;;  %v1438_v3 = vrot.slane %v1111_v50, 1  ;;  %v369_v6 = vsel %vm3729_vm4, 0, %v368_v44  ;;  %v654_v7 = vshrl.u32 %v441_v55, 16  ;;  %p3565_p12 = scmp.ne.s32.totalorder %s3563_s5, %s3564_s6  ;;  %p3570_p2 = scmp.lt.s32.totalorder %s3568_s10, %s3564_s6 }
  0x34   : > { %v782_v5 = vsel %vm3721_vm2, %v482_v33, %v781_v2  ;;  %v3817_v9 = vpack.c.b16 %v1105_v0, %v1105_v0  ;;  %v1473_v10 = vrot.slane %v3451_v59, 1  ;;  %v854_v11 = vld [vmem:[#allocation2 + $0x9c] sm:$0xf]  ;;  %v282_v12 = vld [vmem:[#allocation2 + $0x24] sm:$0x1]  ;;  %v657_v14 = vshll.u32 %v441_v55, 16 }
  0x35   : > { %v1140_v8 = vrot.slane %v1138_v61, 1  ;;  %783 = vst [vmem:[#allocation2 + $0x20] sm:$0x1] %v782_v5  ;;  %v656_v13 = vrot.slane %v654_v7, 7  ;;  %v662_v15 = vshrl.u32 %v442_v60, 16  ;;  %v665_v16 = vshll.u32 %v442_v60, 16  ;;  %p3566_p13 = pnand %p3565_p12, %p3704_p4  ;;  %p3571_p3 = por %p3570_p2, %p3569_p1 }
  0x36   : > { %370 = vst [vmem:[#allocation2 + $0xa4] sm:$0x1] %v369_v6  ;;  %v1153_v19 = vsel %vm1129_vm10, %v1148_v62, %v1152_v63  ;;  %v1474_v20 = vrot.slane %v3817_v9, 1  ;;  %v283_v22 = vsel %vm3721_vm2, 0, %v282_v12  ;;  %v338_v23 = vld [vmem:[#allocation2 + $0x2c] sm:$0x1]  ;;  %v1439_v30 = vsel %vm1436_vm9, %v1437_v48, %v1438_v3 }
  0x37   : > { %v1141_v18 = vsel %vm1129_vm10, %v1136_v57, %v1140_v8  ;;  %v421_v24 = vld [vmem:[%s3740_s8 + $0x10] sm:$0xf]  ;;  %v659_v25 = vor.u32 %v657_v14, %v656_v13  ;;  %v660_v27 = vrot.slane %v656_v13, 4  ;;  %v664_v28 = vrot.slane %v662_v15, 7  ;;  %284 = vst [vmem:[#allocation2 + $0x24] sm:$0x1] %v283_v22  ;;  %p3567_p0 = pneg %p3566_p13 }
  0x38   : > { %1346 = vrot.lane.b32.xlu0 %v1141_v18, %s3635_s13  ;;  %v339_v29 = vsel %vm3729_vm4, 0, %v338_v23  ;;  %v3435_v31 = vld [vmem:[#allocation2 + $0x18] sm:$0xe]  ;;  %v422_v32 = vld [vmem:[%s3740_s8 + $0x14] sm:$0xf]  ;;  %v484_v38 = vshrl.u32 %v421_v24, 16  ;;  %v1475_v49 = vsel %vm1436_vm9, %v1473_v10, %v1474_v20 }
  0x39   : > { %340 = vst [vmem:[#allocation2 + $0x2c] sm:$0x1] %v339_v29  ;;  %v3434_v33 = vld [vmem:[#allocation2 + $0x18] sm:$0xf0]  ;;  %v667_v34 = vor.u32 %v665_v16, %v664_v28  ;;  %v669_v35 = vrot.slane %v664_v28, 4  ;;  %v855_v36 = vsel %vm3761_vm8, %v659_v25, %v854_v11  ;;  %v487_v42 = vshll.u32 %v421_v24, 16  ;;  %p3572_p5 = pnand %p3571_p3, %p3567_p0 }
  0x3a   : > { %v3423_v37 = vld [vmem:[#allocation2 + $0x18] sm:$0xff]   ;;  %1348 = vrot.lane.b32.xlu1 %v1153_v19, %s3635_s13  ;;  %v3436_v39 = vor.u32 %v3435_v31, %v3434_v33  ;;  %856 = vst [vmem:[#allocation2 + $0x9c] sm:$0xf] %v855_v36  ;;  %v486_v45 = vrot.slane %v484_v38, 7  ;;  %v492_v46 = vshrl.u32 %v422_v32, 16  ;;  %v495_v47 = vshll.u32 %v422_v32, 16 }
  0x3b   : > { %v1155_v40 = vshrl.u32 %v3423_v37, 16  ;;  %v1157_v41 = vshll.u32 %v3423_v37, 16  ;;  %v668_v44 = vsel %vm3755_vm7, %v660_v27, %v667_v34  ;;  %v3428_v48 = vld [vmem:[#allocation2 + $0x90] sm:$0xff]   ;;  %v341_v59 = vld [vmem:[#allocation2 + $0x38] sm:$0x1]  ;;  %v1282_v7 = vshll.u32 %v3817_v9, 16 }
  0x3c   : > { %v951_v43 = vld [vmem:[#allocation2 + $0x20] sm:$0x1]  ;;  %v1443_v51 = vrot.slane %v3436_v39, 1  ;;  %857 = vst.msk [vmem:[#allocation2 + $0xa0] sm:$0xf] %vm407_vm6, %v668_v44  ;;  %v489_v55 = vor.u32 %v487_v42, %v486_v45  ;;  %v490_v56 = vrot.slane %v486_v45, 4 }
  0x3d   : > { %v1095_v50 = vunpack.c.l.b16 %v951_v43  ;;  %v858_v52 = vld [vmem:[#allocation2 + $0xa4] sm:$0x1]  ;;  %v1159_v53 = vrot.slane %v1157_v41, 1  ;;  %v494_v57 = vrot.slane %v492_v46, 7  ;;  %v285_v58 = vld [vmem:[#allocation2 + $0x30] sm:$0x1] }
  0x3e   : > { %v859_v54 = vsel %vm3721_vm2, %v669_v35, %v858_v52  ;;  %v784_v62 = vld [vmem:[#allocation2 + $0x24] sm:$0xf]  ;;  %v1275_v63 = vshrl.u32 %v3428_v48, 16  ;;  %v1277_v0 = vshll.u32 %v3428_v48, 16  ;;  %v423_v8 = vld [vmem:[%s3740_s8 + $0x18] sm:$0xf] }
  0x3f   : > { %v1113_v60 = vpack.c.b16 %v1095_v50, %v1095_v50  ;;  %860 = vst [vmem:[#allocation2 + $0xa4] sm:$0x1] %v859_v54  ;;  %v1160_v61 = vor.u32 %v1159_v53, %v1155_v40  ;;  %v497_v2 = vor.u32 %v495_v47, %v494_v57  ;;  %v499_v3 = vrot.slane %v494_v57, 4  ;;  %v424_v9 = vld [vmem:[%s3740_s8 + $0x1c] sm:$0xf] }
  0x40   : > { %1491 = vrot.lane.b32.xlu0 %v1439_v30, %s3634_s12  ;;  %v785_v5 = vsel %vm3761_vm8, %v489_v55, %v784_v62  ;;  %v788_v6 = vld [vmem:[#allocation2 + $0x2c] sm:$0x1]  ;;  %v1279_v12 = vrot.slane %v1277_v0, 1  ;;  %v286_v13 = vsel %vm3721_vm2, 0, %v285_v58  ;;  %v1284_v16 = vrot.slane %v1282_v7, 1 }
  0x41   : > { %v1444_v10 = vrot.slane %v1113_v60, 1  ;;  %v1162_v11 = vshll.u32 %v1113_v60, 16  ;;  %786 = vst [vmem:[#allocation2 + $0x24] sm:$0xf] %v785_v5  ;;  %v498_v14 = vsel %vm3755_vm7, %v490_v56, %v497_v2  ;;  %v789_v15 = vsel %vm3721_vm2, %v499_v3, %v788_v6  ;;  %v315_v23 = vld [vmem:[#allocation2 + $0xa8] sm:$0x1] }
  0x42   : > { %287 = vst [vmem:[#allocation2 + $0x30] sm:$0x1] %v286_v13  ;;  %v342_v18 = vsel %vm3729_vm4, 0, %v341_v59  ;;  %1515 = vrot.lane.b32.xlu1 %v1475_v49, %s3634_s12  ;;  %v1280_v20 = vor.u32 %v1279_v12, %v1275_v63  ;;  %v501_v22 = vshrl.u32 %v423_v8, 16  ;;  %v504_v28 = vshll.u32 %v423_v8, 16 }
  0x43   : > { %v1164_v19 = vrot.slane %v1162_v11, 1  ;;  %787 = vst.msk [vmem:[#allocation2 + $0x28] sm:$0xf] %vm407_vm6, %v498_v14  ;;  %v1445_v24 = vsel %vm1436_vm9, %v1443_v51, %v1444_v10  ;;  %v3856_v25 = vld [vmem:[#allocation2 + $0x9c] sm:$0xff]   ;;  %v509_v29 = vshrl.u32 %v424_v9, 16  ;;  %v512_v30 = vshll.u32 %v424_v9, 16 }
  0x44   : > { %v3858_v27 = vld [vmem:[#allocation2 + $0x9c] sm:$0xf0]  ;;  %790 = vst [vmem:[#allocation2 + $0x2c] sm:$0x1] %v789_v15  ;;  %v1285_v32 = vsel %vm1129_vm10, %v1280_v20, %v1284_v16  ;;  %v371_v33 = vld [vmem:[#allocation2 + $0xb0] sm:$0x1] }
  0x45   : > { %v1165_v31 = vsel %vm1129_vm10, %v1160_v61, %v1164_v19  ;;  %343 = vst [vmem:[#allocation2 + $0x38] sm:$0x1] %v342_v18  ;;  %v443_v34 = vld [vmem:[%s3740_s8 + $0x68] sm:$0xf]  ;;  %v503_v36 = vrot.slane %v501_v22, 7  ;;  %v511_v37 = vrot.slane %v509_v29, 7 }
  0x46   : > { %v962_v35 = vld [vmem:[#allocation2 + $0xa4] sm:$0x1]  ;;  %1350 = vrot.lane.b32.xlu2 %v1165_v31, %s3635_s13  ;;  %v316_v38 = vsel %vm3721_vm2, 0, %v315_v23  ;;  %v372_v39 = vsel %vm3729_vm4, 0, %v371_v33  ;;  %v444_v41 = vld [vmem:[%s3740_s8 + $0x6c] sm:$0xf] }
  0x47   : > { %v1106_v40 = vunpack.c.l.b16 %v962_v35  ;;  %317 = vst [vmem:[#allocation2 + $0xa8] sm:$0x1] %v316_v38  ;;  %v671_v42 = vshrl.u32 %v443_v34, 16  ;;  %v674_v43 = vshll.u32 %v443_v34, 16  ;;  %v506_v45 = vor.u32 %v504_v28, %v503_v36  ;;  %v3531_v8 = vld [vmem:[#allocation2 + $0x9c] sm:$0xe] }
  0x48   : > { %1495 = vrot.lane.b32.xlu0 %v1445_v24, %s3634_s12  ;;  %v3528_v44 = vld [vmem:[#allocation2 + $0x24] sm:$0xe]  ;;  %v507_v46 = vrot.slane %v503_v36, 4  ;;  %v514_v47 = vor.u32 %v512_v30, %v511_v37  ;;  %v516_v48 = vrot.slane %v511_v37, 4  ;;  %373 = vst [vmem:[#allocation2 + $0xb0] sm:$0x1] %v372_v39 }
  0x49   : > { %v3870_v49 = vpack.c.b16 %v1106_v40, %v1106_v40  ;;  %v1287_v50 = vshrl.u32 %v3856_v25, 16  ;;  %v1289_v51 = vshll.u32 %v3856_v25, 16  ;;  %v791_v52 = vld [vmem:[#allocation2 + $0x30] sm:$0xf]  ;;  %v673_v57 = vrot.slane %v671_v42, 7 }
  0x4a   : > { %v3874_v53 = vld [vmem:[#allocation2 + $0x24] sm:$0xff]   ;;  %v515_v55 = vsel %vm3755_vm7, %v507_v46, %v514_v47  ;;  %v792_v56 = vsel %vm3761_vm8, %v506_v45, %v791_v52  ;;  %v679_v58 = vshrl.u32 %v444_v41, 16  ;;  %v288_v10 = vld [vmem:[#allocation2 + $0x3c] sm:$0x1]  ;;  %v682_v13 = vshll.u32 %v444_v41, 16 }
  0x4b   : > { %v3527_v54 = vld [vmem:[#allocation2 + $0x24] sm:$0xf0]  ;;  %v1291_v59 = vrot.slane %v1289_v51, 1  ;;  %v1294_v60 = vshll.u32 %v3870_v49, 16  ;;  %v952_v61 = vld [vmem:[#allocation2 + $0x2c] sm:$0x1]  ;;  %v676_v0 = vor.u32 %v674_v43, %v673_v57  ;;  %v3532_v41 = vor.u32 %v3531_v8, %v3858_v27 }
  0x4c   : > { %793 = vst [vmem:[#allocation2 + $0x30] sm:$0xf] %v792_v56  ;;  %v1096_v62 = vunpack.c.l.b16 %v952_v61  ;;  %v795_v63 = vld [vmem:[#allocation2 + $0x38] sm:$0x1]  ;;  %v677_v2 = vrot.slane %v673_v57, 4  ;;  %v681_v3 = vrot.slane %v679_v58, 7  ;;  %v3529_v7 = vor.u32 %v3528_v44, %v3527_v54 }
  0x4d   : > { %794 = vst.msk [vmem:[#allocation2 + $0x34] sm:$0xf] %vm407_vm6, %v515_v55  ;;  %v1292_v5 = vor.u32 %v1291_v59, %v1287_v50  ;;  %v1296_v6 = vrot.slane %v1294_v60, 1  ;;  %v796_v12 = vsel %vm3721_vm2, %v516_v48, %v795_v63  ;;  %v344_v16 = vld [vmem:[#allocation2 + $0x44] sm:$0x1]  ;;  %v1167_v22 = vshrl.u32 %v3874_v53, 16 }
  0x4e   : > { %v1114_v11 = vpack.c.b16 %v1096_v62, %v1096_v62  ;;  %1370 = vrot.lane.b32.xlu2 %v1285_v32, %s3635_s13  ;;  %v686_v14 = vrot.slane %v681_v3, 4  ;;  %v861_v15 = vld [vmem:[#allocation2 + $0xa8] sm:$0xf]  ;;  %v1446_v9 = vrot.slane %v3529_v7, 1  ;;  %797 = vst [vmem:[#allocation2 + $0x38] sm:$0x1] %v796_v12  ;;  %v684_v24 = vor.u32 %v682_v13, %v681_v3 }
  0x4f   : > { %v1297_v18 = vsel %vm1129_vm10, %v1292_v5, %v1296_v6  ;;  %v862_v19 = vsel %vm3761_vm8, %v676_v0, %v861_v15  ;;  %v865_v20 = vld [vmem:[#allocation2 + $0xb0] sm:$0x1]  ;;  %v1169_v29 = vshll.u32 %v3874_v53, 16  ;;  %v425_v30 = vld [vmem:[%s3740_s8 + $0x20] sm:$0xf]  ;;  %v289_v32 = vsel %vm3721_vm2, 0, %v288_v10 }
  0x50   : > { %1372 = vrot.lane.b32.xlu0 %v1297_v18, %s3635_s13  ;;  %v1447_v23 = vrot.slane %v1114_v11, 1  ;;  %863 = vst [vmem:[#allocation2 + $0xa8] sm:$0xf] %v862_v19  ;;  %v866_v28 = vsel %vm3721_vm2, %v686_v14, %v865_v20  ;;  %v1174_v31 = vshll.u32 %v1114_v11, 16  ;;  %v426_v33 = vld [vmem:[%s3740_s8 + $0x24] sm:$0xf]  ;;  %v685_v35 = vsel %vm3755_vm7, %v677_v2, %v684_v24 }
  0x51   : > { %867 = vst [vmem:[#allocation2 + $0xb0] sm:$0x1] %v866_v28  ;;  %v1171_v36 = vrot.slane %v1169_v29, 1  ;;  %v345_v37 = vsel %vm3729_vm4, 0, %v344_v16  ;;  %v318_v38 = vld [vmem:[#allocation2 + $0xb4] sm:$0x1] }
  0x52   : > { %v1448_v34 = vsel %vm1436_vm9, %v1446_v9, %v1447_v23  ;;  %290 = vst [vmem:[#allocation2 + $0x3c] sm:$0x1] %v289_v32  ;;  %v1176_v40 = vrot.slane %v1174_v31, 1  ;;  %v518_v42 = vshrl.u32 %v425_v30, 16  ;;  %v521_v43 = vshll.u32 %v425_v30, 16 }
  0x53   : > { %1497 = vrot.lane.b32.xlu1 %v1448_v34, %s3634_s12  ;;  %864 = vst.msk [vmem:[#allocation2 + $0xac] sm:$0xf] %vm407_vm6, %v685_v35  ;;  %v374_v44 = vld [vmem:[#allocation2 + $0xbc] sm:$0x1]  ;;  %v1172_v47 = vor.u32 %v1171_v36, %v1167_v22  ;;  %v526_v48 = vshrl.u32 %v426_v33, 16  ;;  %v1477_v50 = vrot.slane %v3870_v49, 1 }
  0x54   : > { %v3424_v39 = vld [vmem:[#allocation2 + $0x30] sm:$0xff]   ;;  %346 = vst [vmem:[#allocation2 + $0x44] sm:$0x1] %v345_v37  ;;  %v520_v51 = vrot.slane %v518_v42, 7  ;;  %v529_v52 = vshll.u32 %v426_v33, 16  ;;  %v319_v54 = vsel %vm3721_vm2, 0, %v318_v38 }
  0x55   : > { %v1179_v45 = vshrl.u32 %v3424_v39, 16  ;;  %v1181_v46 = vshll.u32 %v3424_v39, 16  ;;  %v445_v55 = vld [vmem:[%s3740_s8 + $0x70] sm:$0xf]  ;;  %v953_v56 = vld [vmem:[#allocation2 + $0x38] sm:$0x1]  ;;  %v1177_v27 = vsel %vm1129_vm10, %v1172_v47, %v1176_v40 }
  0x56   : > { %v528_v58 = vrot.slane %v526_v48, 7  ;;  %320 = vst [vmem:[#allocation2 + $0xb4] sm:$0x1] %v319_v54  ;;  %v1097_v59 = vunpack.c.l.b16 %v953_v56  ;;  %1352 = vrot.lane.b32.xlu2 %v1177_v27, %s3635_s13  ;;  %v1476_v60 = vrot.slane %v3532_v41, 1  ;;  %v523_v61 = vor.u32 %v521_v43, %v520_v51  ;;  %v446_v63 = vld [vmem:[%s3740_s8 + $0x74] sm:$0xf] }
  0x57   : > { %v1183_v57 = vrot.slane %v1181_v46, 1  ;;  %v524_v62 = vrot.slane %v520_v51, 4  ;;  %v3453_v2 = vld [vmem:[#allocation2 + $0xa8] sm:$0xe]  ;;  %v375_v6 = vsel %vm3729_vm4, 0, %v374_v44  ;;  %v688_v11 = vshrl.u32 %v445_v55, 16 }
  0x58   : > { %v963_v0 = vld [vmem:[#allocation2 + $0xb0] sm:$0x1]  ;;  %v531_v3 = vor.u32 %v529_v52, %v528_v58  ;;  %v533_v5 = vrot.slane %v528_v58, 4  ;;  %v3914_v7 = vpack.c.b16 %v1097_v59, %v1097_v59  ;;  %376 = vst [vmem:[#allocation2 + $0xbc] sm:$0x1] %v375_v6  ;;  %v691_v12 = vshll.u32 %v445_v55, 16 }
  0x59   : > { %v1184_v49 = vor.u32 %v1183_v57, %v1179_v45  ;;  %v1107_v8 = vunpack.c.l.b16 %v963_v0  ;;  %v798_v10 = vld [vmem:[#allocation2 + $0x3c] sm:$0xf]  ;;  %v696_v18 = vshrl.u32 %v446_v63, 16  ;;  %v699_v9 = vshll.u32 %v446_v63, 16  ;;  %v3437_v24 = vld [vmem:[#allocation2 + $0x30] sm:$0xf0] }
  0x5a   : > { %v3429_v13 = vld [vmem:[#allocation2 + $0xa8] sm:$0xff]   ;;  %v532_v15 = vsel %vm3755_vm7, %v524_v62, %v531_v3  ;;  %v799_v16 = vsel %vm3761_vm8, %v523_v61, %v798_v10  ;;  %v1186_v19 = vshll.u32 %v3914_v7, 16  ;;  %v1478_v29 = vsel %vm1436_vm9, %v1476_v60, %v1477_v50  ;;  %v3438_v41 = vld [vmem:[#allocation2 + $0x30] sm:$0xe]  ;;  %v347_v47 = vld [vmem:[#allocation2 + $0x50] sm:$0x1] }
  0x5b   : > { %v3452_v14 = vld [vmem:[#allocation2 + $0xa8] sm:$0xf0]  ;;  %v1125_v20 = vpack.c.b16 %v1107_v8, %v1107_v8  ;;  %v1299_v22 = vshrl.u32 %v3429_v13, 16  ;;  %v1301_v23 = vshll.u32 %v3429_v13, 16  ;;  %800 = vst [vmem:[#allocation2 + $0x3c] sm:$0xf] %v799_v16  ;;  %v3439_v54 = vor.u32 %v3438_v41, %v3437_v24 }
  0x5c   : > { %v3454_v28 = vor.u32 %v3453_v2, %v3452_v14  ;;  %801 = vst.msk [vmem:[#allocation2 + $0x40] sm:$0xf] %vm407_vm6, %v532_v15  ;;  %v802_v30 = vld [vmem:[#allocation2 + $0x44] sm:$0x1]  ;;  %v690_v31 = vrot.slane %v688_v11, 7  ;;  %v698_v32 = vrot.slane %v696_v18, 7 }
  0x5d   : > { %v1188_v33 = vrot.slane %v1186_v19, 1  ;;  %v1303_v34 = vrot.slane %v1301_v23, 1  ;;  %v1306_v35 = vshll.u32 %v1125_v20, 16  ;;  %v868_v36 = vld [vmem:[#allocation2 + $0xb4] sm:$0xf]  ;;  %v1480_v37 = vrot.slane %v1125_v20, 1 }
  0x5e   : > { %v803_v38 = vsel %vm3721_vm2, %v533_v5, %v802_v30  ;;  %v693_v39 = vor.u32 %v691_v12, %v690_v31  ;;  %v694_v40 = vrot.slane %v690_v31, 4  ;;  %v291_v42 = vld [vmem:[#allocation2 + $0x48] sm:$0x1]  ;;  %1517 = vrot.lane.b32.xlu2 %v1478_v29, %s3634_s12  ;;  %v701_v46 = vor.u32 %v699_v9, %v698_v32  ;;  %v428_v59 = vld [vmem:[%s3740_s8 + $0x2c] sm:$0xf] }
  0x5f   : > { %v1189_v43 = vsel %vm1129_vm10, %v1184_v49, %v1188_v33  ;;  %v1304_v44 = vor.u32 %v1303_v34, %v1299_v22  ;;  %v1308_v45 = vrot.slane %v1306_v35, 1  ;;  %804 = vst [vmem:[#allocation2 + $0x44] sm:$0x1] %v803_v38  ;;  %v1479_v48 = vrot.slane %v3454_v28, 1  ;;  %v872_v52 = vld [vmem:[#allocation2 + $0xbc] sm:$0x1] }
  0x60   : > { %1354 = vrot.lane.b32.xlu0 %v1189_v43, %s3635_s13  ;;  %v703_v50 = vrot.slane %v698_v32, 4  ;;  %v869_v51 = vsel %vm3761_vm8, %v693_v39, %v868_v36  ;;  %v427_v55 = vld [vmem:[%s3740_s8 + $0x28] sm:$0xf]  ;;  %v702_v57 = vsel %vm3755_vm7, %v694_v40, %v701_v46  ;;  %v1450_v27 = vrot.slane %v3914_v7, 1  ;;  %v294_v8 = vld [vmem:[#allocation2 + $0x54] sm:$0x1] }
  0x61   : > { %v1309_v56 = vsel %vm1129_vm10, %v1304_v44, %v1308_v45  ;;  %870 = vst [vmem:[#allocation2 + $0xb4] sm:$0xf] %v869_v51  ;;  %v292_v58 = vsel %vm3721_vm2, 0, %v291_v42  ;;  %v1449_v62 = vrot.slane %v3439_v54, 1  ;;  %v348_v63 = vsel %vm3729_vm4, 0, %v347_v47 }
  0x62   : > { %1374 = vrot.lane.b32.xlu1 %v1309_v56, %s3635_s13  ;;  %v3534_v60 = vld [vmem:[#allocation2 + $0x3c] sm:$0xe]  ;;  %871 = vst.msk [vmem:[#allocation2 + $0xb8] sm:$0xf] %vm407_vm6, %v702_v57  ;;  %v873_v61 = vsel %vm3721_vm2, %v703_v50, %v872_v52  ;;  %v535_v2 = vshrl.u32 %v427_v55, 16  ;;  %v538_v3 = vshll.u32 %v427_v55, 16  ;;  %v1481_v10 = vsel %vm1436_vm9, %v1479_v48, %v1480_v37 }
  0x63   : > { %v3944_v49 = vld [vmem:[#allocation2 + $0x3c] sm:$0xff]   ;;  %874 = vst [vmem:[#allocation2 + $0xbc] sm:$0x1] %v873_v61  ;;  %v543_v5 = vshrl.u32 %v428_v59, 16  ;;  %v1451_v6 = vsel %vm1436_vm9, %v1449_v62, %v1450_v27  ;;  %v546_v7 = vshll.u32 %v428_v59, 16  ;;  %v295_v13 = vsel %vm3721_vm2, 0, %v294_v8 }
  0x64   : > { %v3533_v0 = vld [vmem:[#allocation2 + $0x3c] sm:$0xf0]  ;;  %293 = vst [vmem:[#allocation2 + $0x48] sm:$0x1] %v292_v58  ;;  %v537_v11 = vrot.slane %v535_v2, 7  ;;  %v1191_v23 = vshrl.u32 %v3944_v49, 16 }
  0x65   : > { %349 = vst [vmem:[#allocation2 + $0x50] sm:$0x1] %v348_v63  ;;  %v545_v12 = vrot.slane %v543_v5, 7  ;;  %v3535_v15 = vor.u32 %v3534_v60, %v3533_v0  ;;  %v350_v16 = vld [vmem:[#allocation2 + $0x5c] sm:$0x1]  ;;  %v1193_v24 = vshll.u32 %v3944_v49, 16 }
  0x66   : > { %v954_v14 = vld [vmem:[#allocation2 + $0x44] sm:$0x1]  ;;  %296 = vst [vmem:[#allocation2 + $0x54] sm:$0x1] %v295_v13  ;;  %1499 = vrot.lane.b32.xlu2 %v1451_v6, %s3634_s12  ;;  %v540_v9 = vor.u32 %v538_v3, %v537_v11  ;;  %v541_v19 = vrot.slane %v537_v11, 4  ;;  %v351_v35 = vsel %vm3729_vm4, 0, %v350_v16 }
  0x67   : > { %v1098_v18 = vunpack.c.l.b16 %v954_v14  ;;  %v548_v20 = vor.u32 %v546_v7, %v545_v12  ;;  %v429_v22 = vld [vmem:[%s3740_s8 + $0x30] sm:$0xf]  ;;  %v1452_v28 = vrot.slane %v3535_v15, 1  ;;  %v550_v30 = vrot.slane %v545_v12, 4  ;;  %352 = vst [vmem:[#allocation2 + $0x5c] sm:$0x1] %v351_v35 }
  0x68   : > { %1519 = vrot.lane.b32.xlu0 %v1481_v10, %s3634_s12  ;;  %v3537_v29 = vld [vmem:[#allocation2 + $0xb4] sm:$0xe]  ;;  %v1195_v36 = vrot.slane %v1193_v24, 1  ;;  %v552_v38 = vshrl.u32 %v429_v22, 16  ;;  %v297_v48 = vld [vmem:[#allocation2 + $0x60] sm:$0x1] }
  0x69   : > { %v1116_v31 = vpack.c.b16 %v1098_v18, %v1098_v18  ;;  %v3955_v32 = vld [vmem:[#allocation2 + $0xb4] sm:$0xff]   ;;  %v549_v34 = vsel %vm3755_vm7, %v541_v19, %v548_v20  ;;  %v353_v55 = vld [vmem:[#allocation2 + $0x68] sm:$0x1]  ;;  %v555_v62 = vshll.u32 %v429_v22, 16  ;;  %v432_v6 = vld [vmem:[%s3740_s8 + $0x3c] sm:$0xf] }
  0x6a   : > { %v3536_v33 = vld [vmem:[#allocation2 + $0xb4] sm:$0xf0]  ;;  %v964_v37 = vld [vmem:[#allocation2 + $0xbc] sm:$0x1]  ;;  %808 = vst.msk [vmem:[#allocation2 + $0x4c] sm:$0xf] %vm407_vm6, %v549_v34  ;;  %v1196_v43 = vor.u32 %v1195_v36, %v1191_v23 }
  0x6b   : > { %v1198_v39 = vshll.u32 %v1116_v31, 16  ;;  %v1453_v40 = vrot.slane %v1116_v31, 1  ;;  %v1108_v41 = vunpack.c.l.b16 %v964_v37  ;;  %v805_v42 = vld [vmem:[#allocation2 + $0x48] sm:$0xf]  ;;  %v3538_v44 = vor.u32 %v3537_v29, %v3536_v33  ;;  %v430_v47 = vld [vmem:[%s3740_s8 + $0x34] sm:$0xf] }
  0x6c   : > { %v806_v45 = vsel %vm3761_vm8, %v540_v9, %v805_v42  ;;  %v809_v46 = vld [vmem:[#allocation2 + $0x50] sm:$0x1]  ;;  %v1311_v56 = vshrl.u32 %v3955_v32, 16  ;;  %v1313_v57 = vshll.u32 %v3955_v32, 16  ;;  %v554_v27 = vrot.slane %v552_v38, 7 }
  0x6d   : > { %v1200_v50 = vrot.slane %v1198_v39, 1  ;;  %v1454_v51 = vsel %vm1436_vm9, %v1452_v28, %v1453_v40  ;;  %v1126_v52 = vpack.c.b16 %v1108_v41, %v1108_v41  ;;  %807 = vst [vmem:[#allocation2 + $0x48] sm:$0xf] %v806_v45  ;;  %v810_v54 = vsel %vm3721_vm2, %v550_v30, %v809_v46  ;;  %v812_v58 = vld [vmem:[#allocation2 + $0x54] sm:$0xf] }
  0x6e   : > { %811 = vst [vmem:[#allocation2 + $0x50] sm:$0x1] %v810_v54  ;;  %v1482_v60 = vrot.slane %v3538_v44, 1  ;;  %v431_v63 = vld [vmem:[%s3740_s8 + $0x38] sm:$0xf]  ;;  %v1315_v2 = vrot.slane %v1313_v57, 1  ;;  %v557_v10 = vor.u32 %v555_v62, %v554_v27 }
  0x6f   : > { %v1201_v59 = vsel %vm1129_vm10, %v1196_v43, %v1200_v50  ;;  %v1318_v61 = vshll.u32 %v1126_v52, 16  ;;  %v1483_v0 = vrot.slane %v1126_v52, 1  ;;  %v560_v3 = vshrl.u32 %v430_v47, 16  ;;  %v816_v15 = vld [vmem:[#allocation2 + $0x5c] sm:$0x1] }
  0x70   : > { %1356 = vrot.lane.b32.xlu1 %v1201_v59, %s3635_s13  ;;  %1501 = vrot.lane.b32.xlu0 %v1454_v51, %s3634_s12  ;;  %v563_v5 = vshll.u32 %v430_v47, 16  ;;  %v558_v11 = vrot.slane %v554_v27, 4  ;;  %v298_v12 = vsel %vm3721_vm2, 0, %v297_v48  ;;  %v1316_v13 = vor.u32 %v1315_v2, %v1311_v56  ;;  %v377_v27 = vld [vmem:[#allocation2 + $0xc8] sm:$0x1] }
  0x71   : > { %v3440_v7 = vld [vmem:[#allocation2 + $0x48] sm:$0xf0]  ;;  %v1320_v8 = vrot.slane %v1318_v61, 1  ;;  %v562_v14 = vrot.slane %v560_v3, 7  ;;  %299 = vst [vmem:[#allocation2 + $0x60] sm:$0x1] %v298_v12  ;;  %v813_v18 = vsel %vm3761_vm8, %v557_v10, %v812_v58  ;;  %v1484_v22 = vsel %vm1436_vm9, %v1482_v60, %v1483_v0 }
  0x72   : > { %v354_v16 = vsel %vm3729_vm4, 0, %v353_v55  ;;  %v569_v9 = vshrl.u32 %v431_v63, 16  ;;  %v572_v19 = vshll.u32 %v431_v63, 16  ;;  %v577_v20 = vshrl.u32 %v432_v6, 16  ;;  %814 = vst [vmem:[#allocation2 + $0x54] sm:$0xf] %v813_v18 }
  0x73   : > { %355 = vst [vmem:[#allocation2 + $0x68] sm:$0x1] %v354_v16  ;;  %v1321_v24 = vsel %vm1129_vm10, %v1316_v13, %v1320_v8  ;;  %v565_v28 = vor.u32 %v563_v5, %v562_v14  ;;  %v567_v29 = vrot.slane %v562_v14, 4  ;;  %v580_v46 = vshll.u32 %v432_v6, 16  ;;  %v321_v62 = vld [vmem:[#allocation2 + $0xc0] sm:$0x1] }
  0x74   : > { %v3441_v23 = vld [vmem:[#allocation2 + $0x48] sm:$0xe]  ;;  %1376 = vrot.lane.b32.xlu2 %v1321_v24, %s3635_s13  ;;  %v571_v36 = vrot.slane %v569_v9, 7  ;;  %v579_v40 = vrot.slane %v577_v20, 7  ;;  %v378_v61 = vsel %vm3729_vm4, 0, %v377_v27  ;;  %v322_v5 = vsel %vm3721_vm2, 0, %v321_v62 }
  0x75   : > { %v3983_v30 = vld [vmem:[#allocation2 + $0x48] sm:$0xff]   ;;  %v955_v31 = vld [vmem:[#allocation2 + $0x50] sm:$0x1]  ;;  %v3442_v33 = vor.u32 %v3441_v23, %v3440_v7  ;;  %v566_v38 = vsel %vm3755_vm7, %v558_v11, %v565_v28  ;;  %v817_v39 = vsel %vm3721_vm2, %v567_v29, %v816_v15  ;;  %379 = vst [vmem:[#allocation2 + $0xc8] sm:$0x1] %v378_v61  ;;  %vm1527_vm14 = vcmask 23552  }
  0x76   : > { %v1203_v34 = vshrl.u32 %v3983_v30, 16  ;;  %v1205_v35 = vshll.u32 %v3983_v30, 16  ;;  %v1099_v37 = vunpack.c.l.b16 %v955_v31  ;;  %815 = vst.msk [vmem:[#allocation2 + $0x58] sm:$0xf] %vm407_vm6, %v566_v38  ;;  %v574_v43 = vor.u32 %v572_v19, %v571_v36  ;;  %v300_v63 = vld [vmem:[#allocation2 + $0x6c] sm:$0x1] }
  0x77   : > { %v1455_v41 = vrot.slane %v3442_v33, 1  ;;  %818 = vst [vmem:[#allocation2 + $0x5c] sm:$0x1] %v817_v39  ;;  %v575_v45 = vrot.slane %v571_v36, 4  ;;  %v584_v47 = vrot.slane %v579_v40, 4  ;;  %v582_v54 = vor.u32 %v580_v46, %v579_v40 }
  0x78   : > { %v1207_v42 = vrot.slane %v1205_v35, 1  ;;  %1521 = vrot.lane.b32.xlu1 %v1484_v22, %s3634_s12  ;;  %v1117_v44 = vpack.c.b16 %v1099_v37, %v1099_v37  ;;  %v819_v50 = vld [vmem:[#allocation2 + $0x60] sm:$0xf]  ;;  %v448_v6 = vld [vmem:[%s3740_s8 + $0x7c] sm:$0xf]  ;;  %v301_v10 = vsel %vm3721_vm2, 0, %v300_v63 }
  0x79   : > { %v820_v55 = vsel %vm3761_vm8, %v574_v43, %v819_v50  ;;  %v583_v60 = vsel %vm3755_vm7, %v575_v45, %v582_v54  ;;  %323 = vst [vmem:[#allocation2 + $0xc0] sm:$0x1] %v322_v5  ;;  %v713_v8 = vshrl.u32 %v448_v6, 16  ;;  %v447_v12 = vld [vmem:[%s3740_s8 + $0x78] sm:$0xf]  ;;  %v716_v50 = vshll.u32 %v448_v6, 16 }
  0x7a   : > { %v1208_v48 = vor.u32 %v1207_v42, %v1203_v34  ;;  %v1456_v51 = vrot.slane %v1117_v44, 1  ;;  %v1210_v52 = vshll.u32 %v1117_v44, 16  ;;  %v823_v56 = vld [vmem:[#allocation2 + $0x68] sm:$0x1]  ;;  %821 = vst [vmem:[#allocation2 + $0x60] sm:$0xf] %v820_v55 }
  0x7b   : > { %v824_v57 = vsel %vm3721_vm2, %v584_v47, %v823_v56  ;;  %822 = vst.msk [vmem:[#allocation2 + $0x64] sm:$0xf] %vm407_vm6, %v583_v60  ;;  %v356_v13 = vld [vmem:[#allocation2 + $0x74] sm:$0x1]  ;;  %v705_v14 = vshrl.u32 %v447_v12, 16  ;;  %v715_v18 = vrot.slane %v713_v8, 7 }
  0x7c   : > { %v1457_v58 = vsel %vm1436_vm9, %v1455_v41, %v1456_v51  ;;  %v1212_v59 = vrot.slane %v1210_v52, 1  ;;  %825 = vst [vmem:[#allocation2 + $0x68] sm:$0x1] %v824_v57  ;;  %v357_v15 = vsel %vm3729_vm4, 0, %v356_v13  ;;  %v433_v9 = vld [vmem:[%s3740_s8 + $0x40] sm:$0xf] }
  0x7d   : > { %1503 = vrot.lane.b32.xlu0 %v1457_v58, %s3634_s12  ;;  %v4005_v0 = vld [vmem:[#allocation2 + $0x54] sm:$0xff]   ;;  %302 = vst [vmem:[#allocation2 + $0x6c] sm:$0x1] %v301_v10  ;;  %v707_v23 = vrot.slane %v705_v14, 7  ;;  %v708_v24 = vshll.u32 %v447_v12, 16  ;;  %v586_v42 = vshrl.u32 %v433_v9, 16  ;;  %v718_v58 = vor.u32 %v716_v50, %v715_v18 }
  0x7e   : > { %v4007_v2 = vld [vmem:[#allocation2 + $0x54] sm:$0xf0]  ;;  %v1213_v3 = vsel %vm1129_vm10, %v1208_v48, %v1212_v59  ;;  %v956_v7 = vld [vmem:[#allocation2 + $0x5c] sm:$0x1]  ;;  %358 = vst [vmem:[#allocation2 + $0x74] sm:$0x1] %v357_v15 }
  0x7f   : > { %1358 = vrot.lane.b32.xlu2 %v1213_v3, %s3635_s13  ;;  %v1100_v11 = vunpack.c.l.b16 %v956_v7  ;;  %v1215_v19 = vshrl.u32 %v4005_v0, 16  ;;  %v1217_v20 = vshll.u32 %v4005_v0, 16  ;;  %v710_v40 = vor.u32 %v708_v24, %v707_v23  ;;  %v879_v46 = vld [vmem:[#allocation2 + $0xc8] sm:$0x1]  ;;  %v434_v56 = vld [vmem:[%s3740_s8 + $0x44] sm:$0xf] }
  0x80   : > { %v875_v41 = vld [vmem:[#allocation2 + $0xc0] sm:$0xf]  ;;  %v711_v48 = vrot.slane %v707_v23, 4  ;;  %v720_v51 = vrot.slane %v715_v18, 4  ;;  %v3540_v27 = vld [vmem:[#allocation2 + $0x54] sm:$0xe] }
  0x81   : > { %v4019_v16 = vpack.c.b16 %v1100_v11, %v1100_v11  ;;  %v3444_v34 = vld [vmem:[#allocation2 + $0x60] sm:$0xe]  ;;  %v1219_v35 = vrot.slane %v1217_v20, 1  ;;  %v876_v55 = vsel %vm3761_vm8, %v710_v40, %v875_v41  ;;  %v588_v60 = vrot.slane %v586_v42, 7  ;;  %v359_v12 = vld [vmem:[#allocation2 + $0x80] sm:$0x1] }
  0x82   : > { %v4025_v29 = vld [vmem:[#allocation2 + $0x60] sm:$0xff]   ;;  %877 = vst [vmem:[#allocation2 + $0xc0] sm:$0xf] %v876_v55  ;;  %v880_v59 = vsel %vm3721_vm2, %v720_v51, %v879_v46  ;;  %v719_v5 = vsel %vm3755_vm7, %v711_v48, %v718_v58  ;;  %v589_v6 = vshll.u32 %v433_v9, 16  ;;  %v3541_v8 = vor.u32 %v3540_v27, %v4007_v2  ;;  %v436_v23 = vld [vmem:[%s3740_s8 + $0x4c] sm:$0xf] }
  0x83   : > { %v957_v22 = vld [vmem:[#allocation2 + $0x68] sm:$0x1]  ;;  %v1222_v28 = vshll.u32 %v4019_v16, 16  ;;  %v3443_v33 = vld [vmem:[#allocation2 + $0x60] sm:$0xf0]  ;;  %v1227_v36 = vshrl.u32 %v4025_v29, 16  ;;  %v1220_v43 = vor.u32 %v1219_v35, %v1215_v19 }
  0x84   : > { %v1101_v31 = vunpack.c.l.b16 %v957_v22  ;;  %v1229_v37 = vshll.u32 %v4025_v29, 16  ;;  %v3445_v45 = vor.u32 %v3444_v34, %v3443_v33  ;;  %881 = vst [vmem:[#allocation2 + $0xc8] sm:$0x1] %v880_v59  ;;  %v1459_v3 = vrot.slane %v4019_v16, 1  ;;  %v826_v7 = vld [vmem:[#allocation2 + $0x6c] sm:$0xf] }
  0x85   : > { %v1224_v38 = vrot.slane %v1222_v28, 1  ;;  %878 = vst.msk [vmem:[#allocation2 + $0xc4] sm:$0xf] %vm407_vm6, %v719_v5  ;;  %v594_v10 = vshrl.u32 %v434_v56, 16  ;;  %v597_v11 = vshll.u32 %v434_v56, 16  ;;  %v591_v13 = vor.u32 %v589_v6, %v588_v60 }
  0x86   : > { %v1119_v39 = vpack.c.b16 %v1101_v31, %v1101_v31  ;;  %v1231_v44 = vrot.slane %v1229_v37, 1  ;;  %v1461_v61 = vrot.slane %v3445_v45, 1  ;;  %v592_v14 = vrot.slane %v588_v60, 4  ;;  %v303_v19 = vld [vmem:[#allocation2 + $0x78] sm:$0x1] }
  0x87   : > { %v1225_v52 = vsel %vm1129_vm10, %v1220_v43, %v1224_v38  ;;  %v360_v15 = vsel %vm3729_vm4, 0, %v359_v12  ;;  %v1458_v18 = vrot.slane %v3541_v8, 1  ;;  %v596_v9 = vrot.slane %v594_v10, 7  ;;  %v830_v20 = vld [vmem:[#allocation2 + $0x74] sm:$0x1] }
  0x88   : > { %v1234_v47 = vshll.u32 %v1119_v39, 16  ;;  %v1232_v54 = vor.u32 %v1231_v44, %v1227_v36  ;;  %1360 = vrot.lane.b32.xlu1 %v1225_v52, %s3635_s13  ;;  %v1462_v62 = vrot.slane %v1119_v39, 1  ;;  %361 = vst [vmem:[#allocation2 + $0x80] sm:$0x1] %v360_v15  ;;  %v827_v2 = vsel %vm3761_vm8, %v591_v13, %v826_v7  ;;  %v435_v35 = vld [vmem:[%s3740_s8 + $0x48] sm:$0xf] }
  0x89   : > { %v304_v22 = vsel %vm3721_vm2, 0, %v303_v19  ;;  %v1460_v24 = vsel %vm1436_vm9, %v1458_v18, %v1459_v3  ;;  %v599_v28 = vor.u32 %v597_v11, %v596_v9  ;;  %v601_v31 = vrot.slane %v596_v9, 4  ;;  %828 = vst [vmem:[#allocation2 + $0x6c] sm:$0xf] %v827_v2  ;;  %v3138_v12 = vld [vmem:[%s4545_s2] sm:$0xf] }
  0x8a   : > { %v1236_v57 = vrot.slane %v1234_v47, 1  ;;  %v1463_v16 = vsel %vm1436_vm9, %v1461_v61, %v1462_v62  ;;  %v611_v33 = vshrl.u32 %v436_v23, 16  ;;  %1505 = vrot.lane.b32.xlu2 %v1460_v24, %s3634_s12  ;;  %305 = vst [vmem:[#allocation2 + $0x78] sm:$0x1] %v304_v22  ;;  %v603_v39 = vshrl.u32 %v435_v35, 16 }
  0x8b   : > { %v965_v34 = vld [vmem:[#allocation2 + $0xc8] sm:$0x1]  ;;  %v600_v37 = vsel %vm3755_vm7, %v592_v14, %v599_v28  ;;  %v831_v38 = vsel %vm3721_vm2, %v601_v31, %v830_v20  ;;  %v606_v46 = vshll.u32 %v435_v35, 16  ;;  %v614_v47 = vshll.u32 %v436_v23, 16  ;;  %v3368_v62 = vld [vmem:[%s4545_s2 + $0x8] sm:$0x10] }
  0x8c   : > { %v1237_v63 = vsel %vm1129_vm10, %v1232_v54, %v1236_v57  ;;  %v1109_v36 = vunpack.c.l.b16 %v965_v34  ;;  %v4059_v40 = vld [vmem:[#allocation2 + $0xc0] sm:$0xff]   ;;  %829 = vst.msk [vmem:[#allocation2 + $0x70] sm:$0xf] %vm407_vm6, %v600_v37  ;;  %v613_v41 = vrot.slane %v611_v33, 7  ;;  %v605_v45 = vrot.slane %v603_v39, 7 }
  0x8d   : > { %1362 = vrot.lane.b32.xlu0 %v1237_v63, %s3635_s13  ;;  %v1323_v43 = vshrl.u32 %v4059_v40, 16  ;;  %v1325_v44 = vshll.u32 %v4059_v40, 16  ;;  %832 = vst [vmem:[#allocation2 + $0x74] sm:$0x1] %v831_v38  ;;  %v3224_v61 = vld [vmem:[%s4545_s2 + $0x8] sm:$0xf] }
  0x8e   : > { %v4062_v42 = vpack.c.b16 %v1109_v36, %v1109_v36  ;;  %v618_v48 = vrot.slane %v613_v41, 4  ;;  %v609_v54 = vrot.slane %v605_v45, 4  ;;  %v608_v56 = vor.u32 %v606_v46, %v605_v45  ;;  %v3351_v15 = vld [vmem:[%s4545_s2] sm:$0x10]  ;;  %v362_v33 = vld [vmem:[#allocation2 + $0x8c] sm:$0x1] }
  0x8f   : > { %v837_v50 = vld [vmem:[#allocation2 + $0x80] sm:$0x1]  ;;  %v1327_v51 = vrot.slane %v1325_v44, 1  ;;  %v616_v57 = vor.u32 %v614_v47, %v613_v41  ;;  %v3636_v8 = vmov 65535   ;;  %v3225_v11 = vor.u32 %v3368_v62, %v3224_v61  ;;  %v306_v24 = vld [vmem:[#allocation2 + $0x84] sm:$0x1] }
  0x90   : > { %1507 = vrot.lane.b32.xlu1 %v1463_v16, %s3634_s12  ;;  %v1330_v52 = vshll.u32 %v4062_v42, 16  ;;  %v3543_v55 = vld [vmem:[#allocation2 + $0x6c] sm:$0xe]  ;;  %v838_v27 = vsel %vm3721_vm2, %v618_v48, %v837_v50  ;;  %v1934_v10 = vsel %vm1932_vm11, 4294967295, %v3636_v8  ;;  %v3139_v9 = vor.u32 %v3351_v15, %v3138_v12  ;;  %v3310_v36 = vld [vmem:[%s4545_s2 + $0x10] sm:$0xf] }
  0x91   : > { %v1328_v58 = vor.u32 %v1327_v51, %v1323_v43  ;;  %v833_v60 = vld [vmem:[#allocation2 + $0x78] sm:$0xf]  ;;  %839 = vst [vmem:[#allocation2 + $0x80] sm:$0x1] %v838_v27  ;;  %v617_v63 = vsel %vm3755_vm7, %v609_v54, %v616_v57  ;;  %v1935_v14 = vsel %vm1933_vm12, %v1934_v10, 0  ;;  %v307_v45 = vsel %vm3721_vm2, 0, %v306_v24 }
  0x92   : > { %v1332_v59 = vrot.slane %v1330_v52, 1  ;;  %v834_v3 = vsel %vm3761_vm8, %v608_v56, %v833_v60  ;;  %v2230_v18 = vand.u32 %v3225_v11, %v1935_v14  ;;  %836 = vst.msk [vmem:[#allocation2 + $0x7c] sm:$0xf] %vm407_vm6, %v617_v63  ;;  %v1937_v20 = vand.u32 %v3139_v9, %v1935_v14  ;;  %v3385_v37 = vld [vmem:[%s4545_s2 + $0x10] sm:$0x10] }
  0x93   : > { %v4080_v6 = vld [vmem:[#allocation2 + $0x6c] sm:$0xff]   ;;  %835 = vst [vmem:[#allocation2 + $0x78] sm:$0xf] %v834_v3  ;;  %v3311_v44 = vor.u32 %v3385_v37, %v3310_v36  ;;  %v438_v47 = vld [vmem:[%s3740_s8 + $0x54] sm:$0xf]  ;;  %v363_v52 = vsel %vm3729_vm4, 0, %v362_v33 }
  0x94   : > { %v1333_v5 = vsel %vm1129_vm10, %v1328_v58, %v1332_v59  ;;  %v3542_v7 = vld [vmem:[#allocation2 + $0x6c] sm:$0xf0]  ;;  %v958_v13 = vld [vmem:[#allocation2 + $0x74] sm:$0x1]  ;;  %2239 = vmatpush.bf16.msra.mxu1 %v2230_v18  ;;  %1946 = vmatpush.bf16.msra.mxu0 %v1937_v20  ;;  %v1241_v31 = vshll.u32 %v4080_v6, 16  ;;  %v1239_v34 = vshrl.u32 %v4080_v6, 16 }
  0x95   : > { %1378 = vrot.lane.b32.xlu0 %v1333_v5, %s3635_s13  ;;  %v1102_v16 = vunpack.c.l.b16 %v958_v13  ;;  %v3544_v19 = vor.u32 %v3543_v55, %v3542_v7  ;;  %3458 = vmatpush.bf16.msra.mxu3 %v1937_v20  ;;  %v437_v46 = vld [vmem:[%s3740_s8 + $0x50] sm:$0xf]  ;;  %308 = vst [vmem:[#allocation2 + $0x84] sm:$0x1] %v307_v45  ;;  %v4108_v56 = vand.u32 %v3311_v44, %v1935_v14  ;;  %v628_v12 = vshrl.u32 %v438_v47, 16 }
  0x96   : > { %v1243_v43 = vrot.slane %v1241_v31, 1  ;;  %364 = vst [vmem:[#allocation2 + $0x8c] sm:$0x1] %v363_v52  ;;  %v620_v58 = vshrl.u32 %v437_v46, 16  ;;  %v623_v7 = vshll.u32 %v437_v46, 16  ;;  %v631_v14 = vshll.u32 %v438_v47, 16 }
  0x97   : > { %v1120_v2 = vpack.c.b16 %v1102_v16, %v1102_v16  ;;  %v1464_v22 = vrot.slane %v3544_v19, 1  ;;  %2595 = vmatpush.bf16.msra.mxu2 %v4108_v56  ;;  %v3455_v9 = vld [vmem:[#allocation2 + $0xc0] sm:$0xf0]  ;;  %v3456_v19 = vld [vmem:[#allocation2 + $0xc0] sm:$0xe]  ;;  %v630_v20 = vrot.slane %v628_v12, 7 }
  0x98   : > { %v959_v23 = vld [vmem:[#allocation2 + $0x80] sm:$0x1]  ;;  %v1244_v55 = vor.u32 %v1243_v43, %v1239_v34  ;;  %v622_v5 = vrot.slane %v620_v58, 7  ;;  %vm1727_vm15 = vcmask 68608   ;;  %vm1883_vm0 = vcmask 72704  }
  0x99   : > { %v1465_v28 = vrot.slane %v1120_v2, 1  ;;  %v1246_v35 = vshll.u32 %v1120_v2, 16  ;;  %v1103_v38 = vunpack.c.l.b16 %v959_v23  ;;  %3459 = vmatpush.bf16.msrb.mxu3 %v2230_v18  ;;  %v3446_v27 = vld [vmem:[#allocation2 + $0x78] sm:$0xf0]  ;;  %v633_v31 = vor.u32 %v631_v14, %v630_v20 }
  0x9a   : > { %v3447_v51 = vld [vmem:[#allocation2 + $0x78] sm:$0xe]  ;;  %v625_v13 = vor.u32 %v623_v7, %v622_v5  ;;  %v626_v2 = vrot.slane %v622_v5, 4  ;;  %v635_v33 = vrot.slane %v630_v20, 4  ;;  %v324_v20 = vld [vmem:[#allocation2 + $0xcc] sm:$0x1] }
  0x9b   : > { %v1466_v41 = vsel %vm1436_vm9, %v1464_v22, %v1465_v28  ;;  %v1248_v48 = vrot.slane %v1246_v35, 1  ;;  %v1121_v50 = vpack.c.b16 %v1103_v38, %v1103_v38  ;;  %v4110_v57 = vld [vmem:[#allocation2 + $0x78] sm:$0xff]   ;;  %v3448_v62 = vor.u32 %v3447_v51, %v3446_v27  ;;  %v3523_v27 = vld [vmem:[#allocation2 + $0x90] sm:$0xff]  }
  0x9c   : > { %1509 = vrot.lane.b32.xlu1 %v1466_v41, %s3634_s12  ;;  %v1251_v59 = vshrl.u32 %v4110_v57, 16  ;;  %v1253_v60 = vshll.u32 %v4110_v57, 16  ;;  %v3457_v22 = vor.u32 %v3456_v19, %v3455_v9  ;;  %v840_v23 = vld [vmem:[#allocation2 + $0x84] sm:$0xf]  ;;  %v1486_v28 = vrot.slane %v4062_v42, 1 }
  0x9d   : > { %v1258_v61 = vshll.u32 %v1121_v50, 16  ;;  %v1249_v63 = vsel %vm1129_vm10, %v1244_v55, %v1248_v48  ;;  %v1468_v3 = vrot.slane %v1121_v50, 1  ;;  %v1467_v11 = vrot.slane %v3448_v62, 1  ;;  %v844_v34 = vld [vmem:[#allocation2 + $0x8c] sm:$0x1] }
  0x9e   : > { %1364 = vrot.lane.b32.xlu2 %v1249_v63, %s3635_s13  ;;  %v1255_v8 = vrot.slane %v1253_v60, 1  ;;  %v1485_v37 = vrot.slane %v3457_v22, 1  ;;  %v841_v38 = vsel %vm3761_vm8, %v625_v13, %v840_v23  ;;  %v634_v43 = vsel %vm3755_vm7, %v626_v2, %v633_v31 }
  0x9f   : > { %v1260_v10 = vrot.slane %v1258_v61, 1  ;;  %v1469_v18 = vsel %vm1436_vm9, %v1467_v11, %v1468_v3  ;;  %842 = vst [vmem:[#allocation2 + $0x84] sm:$0xf] %v841_v38  ;;  %v845_v42 = vsel %vm3721_vm2, %v635_v33, %v844_v34  ;;  %v380_v34 = vld [vmem:[#allocation2 + $0xd4] sm:$0x1]  ;;  %vm2028_vm1 = vcmask 523264  }
  0xa0   : > { %v4098_v39 = vpop.permute.xlu2 %1350  ;;  %v1256_v16 = vor.u32 %v1255_v8, %v1251_v59  ;;  %v1487_v45 = vsel %vm1436_vm9, %v1485_v37, %v1486_v28  ;;  %843 = vst.msk [vmem:[#allocation2 + $0x88] sm:$0xf] %vm407_vm6, %v634_v43  ;;  %v3071_v43 = vld [vmem:[%s3745_s11 + $0xc] sm:$0xf] }
  0xa1   : > { %846 = vst [vmem:[#allocation2 + $0x8c] sm:$0x1] %v845_v42 }
  0xa2   : > { %v1261_v24 = vsel %vm1129_vm10, %v1256_v16, %v1260_v10 }
  0xa3   : > { %1366 = vrot.lane.b32.xlu0 %v1261_v24, %s3635_s13  ;;  %v325_v24 = vsel %vm3721_vm2, 0, %v324_v20 }
  0xa4   : > { %v1494_v54 = vpop.permute.xlu1 %1493  ;;  %1511 = vrot.lane.b32.xlu1 %v1469_v18, %s3634_s12  ;;  %v3524_v18 = vld [vmem:[#allocation2 + $0x18] sm:$0xff]   ;;  %326 = vst [vmem:[#allocation2 + $0xcc] sm:$0x1] %v325_v24 }
  0xa5   : > { %v1533_v9 = vsel %vm1527_vm14, %v3524_v18, %v4098_v39 }
  0xa6   : > { %1523 = vrot.lane.b32.xlu2 %v1487_v45, %s3634_s12  ;;  %v3608_v61 = vld [vmem:[#allocation2 + $0x84] sm:$0xe] }
  0xa7   : > { %v4140_v5 = vld [vmem:[#allocation2 + $0x84] sm:$0xff]  }
  0xa8   : > { %v1371_v36 = vpop.permute.xlu2 %1370  ;;  %v3607_v7 = vld [vmem:[#allocation2 + $0x84] sm:$0xf0]  ;;  %v960_v12 = vld [vmem:[#allocation2 + $0x8c] sm:$0x1]  ;;  %v1263_v18 = vshrl.u32 %v4140_v5, 16 }
  0xa9   : > { %v1104_v13 = vunpack.c.l.b16 %v960_v12  ;;  %v3609_v16 = vor.u32 %v3608_v61, %v3607_v7 }
  0xaa   : > { %v1347_v15 = vpop.permute.xlu0 %1346 }
  0xab   : > { %v4146_v2 = vpack.c.b16 %v1104_v13, %v1104_v13  ;;  %v1470_v23 = vrot.slane %v3609_v16, 1 }
  0xac   : > { %v1349_v35 = vpop.permute.xlu1 %1348 }
  0xad   : > { %v1531_v41 = vsel %vm1527_vm14, %v3797_v17, %v1349_v35  ;;  %v3522_v17 = vld [vmem:[#allocation2] sm:$0xff]   ;;  %v1471_v33 = vrot.slane %v4146_v2, 1  ;;  %v3070_v35 = vld [vmem:[%s3745_s11 + $0x8] sm:$0xf] }
  0xae   : > { %v1568_v44 = vsel %vm1564_vm13, %v1531_v41, %v1494_v54  ;;  %v1529_v48 = vsel %vm1527_vm14, %v3522_v17, %v1347_v15  ;;  %v1553_v54 = vsel %vm1527_vm14, %v3523_v27, %v1371_v36  ;;  %v381_v41 = vsel %vm3729_vm4, 0, %v380_v34 }
  0xaf   : > { %v1621_v46 = vunpack.c.l.b16 %v1568_v44  ;;  %v1622_v47 = vunpack.c.h.b16 %v1568_v44  ;;  %v1472_v38 = vsel %vm1436_vm9, %v1470_v23, %v1471_v33  ;;  %382 = vst [vmem:[#allocation2 + $0xd4] sm:$0x1] %v381_v41  ;;  %v886_v42 = vshrl.u32 %v3070_v35, 16 }
  0xb0   : > { %v1353_v11 = vpop.permute.xlu2 %1352  ;;  %1513 = vrot.lane.b32.xlu0 %v1472_v38, %s3634_s12  ;;  %v894_v44 = vshrl.u32 %v3071_v43, 16 }
  0xb1   : > { %v1657_v50 = vpack.c.b16 %v1621_v46, %v1621_v46  ;;  %v1658_v51 = vpack.c.b16 %v1622_v47, %v1622_v47  ;;  %v889_v46 = vshll.u32 %v3070_v35, 16  ;;  %v897_v47 = vshll.u32 %v3071_v43, 16 }
  0xb2   : > { %v1492_v52 = vpop.permute.xlu0 %1491  ;;  %v1535_v4 = vsel %vm1527_vm14, %v3874_v53, %v1353_v11 }
  0xb3   : > { %v1566_v55 = vsel %vm1564_vm13, %v1529_v48, %v1492_v52  ;;  %1730 = vst.msk [vmem:[#allocation3 + $0x8] sm:$0xf] %vm1727_vm15, %v1657_v50  ;;  %v888_v48 = vrot.slane %v886_v42, 7  ;;  %v896_v50 = vrot.slane %v894_v44, 7 }
  0xb4   : > { %v1619_v58 = vunpack.c.l.b16 %v1566_v55  ;;  %v1620_v59 = vunpack.c.h.b16 %v1566_v55  ;;  %1731 = vst.msk [vmem:[#allocation3 + $0xc] sm:$0xf] %vm1727_vm15, %v1658_v51  ;;  %v1516_v60 = vpop.permute.xlu1 %1515 }
  0xb5   : > { %v1590_v3 = vsel %vm1564_vm13, %v1553_v54, %v1516_v60  ;;  %v891_v27 = vor.u32 %v889_v46, %v888_v48  ;;  %v892_v54 = vrot.slane %v888_v48, 4  ;;  %v906_v60 = vld [vmem:[#allocation2 + $0xcc] sm:$0xf]  ;;  %v901_v7 = vrot.slane %v896_v50, 4 }
  0xb6   : > { %v1655_v62 = vpack.c.b16 %v1619_v58, %v1619_v58  ;;  %v1656_v63 = vpack.c.b16 %v1620_v59, %v1620_v59  ;;  %v1643_v8 = vunpack.c.l.b16 %v1590_v3  ;;  %v1644_v10 = vunpack.c.h.b16 %v1590_v3  ;;  %v910_v13 = vld [vmem:[#allocation2 + $0xd4] sm:$0x1]  ;;  %v3526_v48 = vld [vmem:[#allocation2 + $0xa8] sm:$0xff]  }
  0xb7   : > { %v899_v58 = vor.u32 %v897_v47, %v896_v50  ;;  %v907_v3 = vsel %vm3761_vm8, %v891_v27, %v906_v60  ;;  %v911_v26 = vsel %vm3721_vm2, %v901_v7, %v910_v13  ;;  %vm2905_vm2 = vcmask 519168  }
  0xb8   : > { %1728 = vst.msk [vmem:[#allocation3] sm:$0xf] %vm1727_vm15, %v1655_v62  ;;  %v1679_v14 = vpack.c.b16 %v1643_v8, %v1643_v8  ;;  %v1680_v15 = vpack.c.b16 %v1644_v10, %v1644_v10  ;;  %v1518_v17 = vpop.permute.xlu2 %1517 }
  0xb9   : > { %1729 = vst.msk [vmem:[#allocation3 + $0x4] sm:$0xf] %vm1727_vm15, %v1656_v63  ;;  %v900_v53 = vsel %vm3755_vm7, %v892_v54, %v899_v58 }
  0xba   : > { %v1496_v19 = vpop.permute.xlu0 %1495  ;;  %1752 = vst.msk [vmem:[#allocation3 + $0x60] sm:$0xf] %vm1727_vm15, %v1679_v14 }
  0xbb   : > { %v1570_v22 = vsel %vm1564_vm13, %v1533_v9, %v1496_v19  ;;  %1753 = vst.msk [vmem:[#allocation3 + $0x64] sm:$0xf] %vm1727_vm15, %v1680_v15  ;;  %v3352_v39 = vld [vmem:[#allocation3 + $0x8] sm:$0xff]  ;;  %v1270_v19 = vshll.u32 %v4146_v2, 16  ;;  %v3525_v2 = vld [vmem:[#allocation2 + $0x30] sm:$0xff]  }
  0xbc   : > { %v1623_v28 = vunpack.c.l.b16 %v1570_v22  ;;  %v1624_v31 = vunpack.c.h.b16 %v1570_v22  ;;  %3226 = vmatmul.msk.bf16.vlgmr.msra.gmra.mxu1 %vm1883_vm0, %v3352_v39  ;;  %908 = vst [vmem:[#allocation2 + $0xcc] sm:$0xf] %v907_v3  ;;  %v3336_v24 = vld [vmem:[#allocation3 + $0x8] sm:$0xff] }
  0xbd   : > { %909 = vst.msk [vmem:[#allocation2 + $0xd0] sm:$0xf] %vm407_vm6, %v900_v53  ;;  %v1272_v23 = vrot.slane %v1270_v19, 1 }
  0xbe   : > { %v1659_v36 = vpack.c.b16 %v1623_v28, %v1623_v28  ;;  %v1660_v37 = vpack.c.b16 %v1624_v31, %v1624_v31  ;;  %912 = vst [vmem:[#allocation2 + $0xd4] sm:$0x1] %v911_v26 }
  0xc0   : > { %1732 = vst.msk [vmem:[#allocation3 + $0x10] sm:$0xf] %vm1727_vm15, %v1659_v36  ;;  %v3335_v45 = vld [vmem:[#allocation3] sm:$0xff]  ;;  %v1500_v28 = vpop.permute.xlu2 %1499 }
  0xc1   : > { %1733 = vst.msk [vmem:[#allocation3 + $0x14] sm:$0xf] %vm1727_vm15, %v1660_v37  ;;  %3140 = vmatmul.msk.bf16.vlgmr.msra.gmra.mxu0 %vm1883_vm0, %v3335_v45 }
  0xc2   : > { %v1373_v51 = vpop.permute.xlu0 %1372  ;;  %v3347_v55 = vld [vmem:[#allocation3 + $0x60] sm:$0xff] }
  0xc3   : > { %v1555_v52 = vsel %vm1527_vm14, %v3856_v25, %v1373_v51  ;;  %3152 = vmatmul.msk.bf16.vlgmr.msra.gmra.mxu3 %vm1883_vm0, %v3347_v55 }
  0xc4   : > { %v1592_v59 = vsel %vm1564_vm13, %v1555_v52, %v1518_v17  ;;  %3460 = vmatpush.bf16.msra.mxu3 %v4108_v56  ;;  %v1265_v56 = vshll.u32 %v4140_v5, 16  ;;  %v4188_v20 = vld [vmem:[#allocation2 + $0xcc] sm:$0xff]  }
  0xc5   : > { %v1498_v61 = vpop.permute.xlu1 %1497  ;;  %v1645_v62 = vunpack.c.l.b16 %v1592_v59  ;;  %v1646_v63 = vunpack.c.h.b16 %v1592_v59  ;;  %v4190_v22 = vld [vmem:[#allocation2 + $0xcc] sm:$0xf0]  ;;  %v1337_v35 = vshll.u32 %v4188_v20, 16  ;;  %v966_v37 = vld [vmem:[#allocation2 + $0xd4] sm:$0x1]  ;;  %v1335_v44 = vshrl.u32 %v4188_v20, 16 }
  0xc6   : > { %v1572_v25 = vsel %vm1564_vm13, %v1535_v4, %v1498_v61  ;;  %v1267_v9 = vrot.slane %v1265_v56, 1  ;;  %v1110_v42 = vunpack.c.l.b16 %v966_v37  ;;  %v3546_v56 = vld [vmem:[#allocation2 + $0xcc] sm:$0xe] }
  0xc7   : > { %v1625_v8 = vunpack.c.l.b16 %v1572_v25  ;;  %v1626_v10 = vunpack.c.h.b16 %v1572_v25  ;;  %v1681_v11 = vpack.c.b16 %v1645_v62, %v1645_v62  ;;  %v1682_v12 = vpack.c.b16 %v1646_v63, %v1646_v63 }
  0xc8   : > { %v3369_v14 = vld [vmem:[#allocation3 + $0x10] sm:$0xff]  ;;  %v1268_v1 = vor.u32 %v1267_v9, %v1263_v18  ;;  %v1339_v45 = vrot.slane %v1337_v35, 1  ;;  %v1128_v17 = vpack.c.b16 %v1110_v42, %v1110_v42 }
  0xc9   : > { %v1661_v15 = vpack.c.b16 %v1625_v8, %v1625_v8  ;;  %v1662_v21 = vpack.c.b16 %v1626_v10, %v1626_v10  ;;  %1754 = vst.msk [vmem:[#allocation3 + $0x68] sm:$0xf] %vm1727_vm15, %v1681_v11  ;;  %3312 = vmatmul.msk.bf16.vlgmr.msra.gmra.mxu2 %vm1883_vm0, %v3369_v14  ;;  %v3353_v16 = vld [vmem:[#allocation3 + $0x10] sm:$0xff] }
  0xca   : > { %1755 = vst.msk [vmem:[#allocation3 + $0x6c] sm:$0xf] %vm1727_vm15, %v1682_v12  ;;  %v1273_v39 = vsel %vm1129_vm10, %v1268_v1, %v1272_v23  ;;  %v1340_v51 = vor.u32 %v1339_v45, %v1335_v44  ;;  %v1342_v52 = vshll.u32 %v1128_v17, 16  ;;  %v3337_v53 = vld [vmem:[#allocation3 + $0x10] sm:$0xff]  ;;  %v1489_v23 = vrot.slane %v1128_v17, 1 }
  0xcb   : > { %1734 = vst.msk [vmem:[#allocation3 + $0x18] sm:$0xf] %vm1727_vm15, %v1661_v15  ;;  %1368 = vrot.lane.b32.xlu2 %v1273_v39, %s3635_s13 }
  0xcc   : > { %1735 = vst.msk [vmem:[#allocation3 + $0x1c] sm:$0xf] %vm1727_vm15, %v1662_v21  ;;  %3227 = vmatmul.msk.bf16.gmra.mxu1 %vm1883_vm0, %v3353_v16  ;;  %v1344_v54 = vrot.slane %v1342_v52, 1 }
  0xce   : > { %v1345_v61 = vsel %vm1129_vm10, %v1340_v51, %v1344_v54  ;;  %v1377_v3 = vpop.permute.xlu2 %1376 }
  0xcf   : > { %1380 = vrot.lane.b32.xlu1 %v1345_v61, %s3635_s13  ;;  %v1559_v15 = vsel %vm1527_vm14, %v3955_v32, %v1377_v3  ;;  %v3547_v32 = vor.u32 %v3546_v56, %v4190_v22 }
  0xd1   : > { %v3348_v31 = vld [vmem:[#allocation3 + $0x68] sm:$0xff]  ;;  %3141 = vmatmul.msk.bf16.gmra.mxu0 %vm1883_vm0, %v3336_v24  ;;  %v1488_v39 = vrot.slane %v3547_v32, 1 }
  0xd2   : > { %v1355_v33 = vpop.permute.xlu0 %1354 }
  0xd3   : > { %v1537_v34 = vsel %vm1527_vm14, %v3525_v2, %v1355_v33  ;;  %3153 = vmatmul.msk.bf16.gmra.mxu3 %vm1883_vm0, %v3348_v31  ;;  %v3370_v4 = vld [vmem:[#allocation3 + $0x18] sm:$0xff]  ;;  %v1490_v35 = vsel %vm1436_vm9, %v1488_v39, %v1489_v23 }
  0xd4   : > { %v1574_v36 = vsel %vm1564_vm13, %v1537_v34, %v1500_v28  ;;  %v1375_v43 = vpop.permute.xlu1 %1374  ;;  %v3354_v60 = vld [vmem:[#allocation3 + $0x18] sm:$0xff]  ;;  %1525 = vrot.lane.b32.xlu2 %v1490_v35, %s3634_s12  ;;  %s243_s12 = sand.u32 1, %s3616_s16  }
  0xd5   : > { %v1627_v38 = vunpack.c.l.b16 %v1574_v36  ;;  %v1628_v41 = vunpack.c.h.b16 %v1574_v36  ;;  %v1557_v50 = vsel %vm1527_vm14, %v3526_v48, %v1375_v43  ;;  %v3338_v2 = vld [vmem:[#allocation3 + $0x18] sm:$0xff]  ;;  %s3065_s13 = sshll.u32 %s243_s12, 7  ;;  %s2939_s18 = scalar_lea.sflag [#allocation6], %s243_s12 }
  0xd6   : > { %s4318_s14 = scalar_lea.vmem [#allocation5], %s3065_s13 }
  0xd7   : > { %v1663_v46 = vpack.c.b16 %v1627_v38, %v1627_v38  ;;  %v1664_v47 = vpack.c.b16 %v1628_v41, %v1628_v41  ;;  %s2954_s29 = sshll.u32 %s4318_s14, 4  ;;  %s2955_s29 = int_to_ptr.vmem [resolvable:$true] %s2954_s29 }
  0xd9   : > { %1736 = vst.msk [vmem:[#allocation3 + $0x20] sm:$0xf] %vm1727_vm15, %v1663_v46  ;;  %3313 = vmatmul.msk.bf16.gmra.mxu2 %vm1883_vm0, %v3370_v4 }
  0xda   : > { %1737 = vst.msk [vmem:[#allocation3 + $0x24] sm:$0xf] %vm1727_vm15, %v1664_v47  ;;  %v1520_v55 = vpop.permute.xlu0 %1519 }
  0xdb   : > { %v1594_v27 = vsel %vm1564_vm13, %v1557_v50, %v1520_v55 }
  0xdc   : > { %v1647_v58 = vunpack.c.l.b16 %v1594_v27  ;;  %v1648_v59 = vunpack.c.h.b16 %v1594_v27  ;;  %3228 = vmatmul.msk.bf16.gmra.mxu1 %vm1883_vm0, %v3354_v60  ;;  %v3364_v60 = vld [vmem:[#allocation3 + $0x68] sm:$0xff] }
  0xde   : > { %v1683_v62 = vpack.c.b16 %v1647_v58, %v1647_v58  ;;  %v1684_v63 = vpack.c.b16 %v1648_v59, %v1648_v59 }
  0xe0   : > { %1756 = vst.msk [vmem:[#allocation3 + $0x70] sm:$0xf] %vm1727_vm15, %v1683_v62 }
  0xe1   : > { %1757 = vst.msk [vmem:[#allocation3 + $0x74] sm:$0xf] %vm1727_vm15, %v1684_v63  ;;  %3142 = vmatmul.msk.bf16.gmra.mxu0 %vm1883_vm0, %v3337_v53  ;;  %v3371_v26 = vld [vmem:[#allocation3 + $0x20] sm:$0xff] }
  0xe2   : > { %v1357_v25 = vpop.permute.xlu1 %1356  ;;  %v1502_v7 = vpop.permute.xlu0 %1501  ;;  %v3355_v1 = vld [vmem:[#allocation3 + $0x20] sm:$0xff] }
  0xe3   : > { %v1539_v8 = vsel %vm1527_vm14, %v3944_v49, %v1357_v25  ;;  %v1359_v49 = vpop.permute.xlu2 %1358  ;;  %v3339_v50 = vld [vmem:[#allocation3 + $0x20] sm:$0xff] }
  0xe4   : > { %v1576_v10 = vsel %vm1564_vm13, %v1539_v8, %v1502_v7  ;;  %v1541_v24 = vsel %vm1527_vm14, %v3983_v30, %v1359_v49 }
  0xe5   : > { %v1629_v11 = vunpack.c.l.b16 %v1576_v10  ;;  %v1630_v12 = vunpack.c.h.b16 %v1576_v10 }
  0xe7   : > { %v1665_v13 = vpack.c.b16 %v1629_v11, %v1629_v11  ;;  %v1666_v14 = vpack.c.b16 %v1630_v12, %v1630_v12 }
  0xe8   : > { %v3349_v21 = vld [vmem:[#allocation3 + $0x70] sm:$0xff] }
  0xe9   : > { %1738 = vst.msk [vmem:[#allocation3 + $0x28] sm:$0xf] %vm1727_vm15, %v1665_v13  ;;  %3154 = vmatmul.msk.bf16.gmra.mxu3 %vm1883_vm0, %v3349_v21  ;;  %3314 = vmatmul.msk.bf16.gmra.mxu2 %vm1883_vm0, %v3371_v26  ;;  %v3365_v21 = vld [vmem:[#allocation3 + $0x70] sm:$0xff] }
  0xea   : > { %1739 = vst.msk [vmem:[#allocation3 + $0x2c] sm:$0xf] %vm1727_vm15, %v1666_v14  ;;  %v1522_v16 = vpop.permute.xlu1 %1521 }
  0xeb   : > { %v1596_v18 = vsel %vm1564_vm13, %v1559_v15, %v1522_v16  ;;  %v1506_v43 = vpop.permute.xlu2 %1505 }
  0xec   : > { %v1649_v9 = vunpack.c.l.b16 %v1596_v18  ;;  %v1650_v19 = vunpack.c.h.b16 %v1596_v18  ;;  %3229 = vmatmul.msk.bf16.gmra.mxu1 %vm1883_vm0, %v3355_v1 }
  0xee   : > { %v1685_v28 = vpack.c.b16 %v1649_v9, %v1649_v9  ;;  %v1686_v31 = vpack.c.b16 %v1650_v19, %v1650_v19 }
  0xef   : > { %v1504_v33 = vpop.permute.xlu0 %1503 }
  0xf0   : > { %1758 = vst.msk [vmem:[#allocation3 + $0x78] sm:$0xf] %vm1727_vm15, %v1685_v28  ;;  %v1578_v34 = vsel %vm1564_vm13, %v1541_v24, %v1504_v33 }
  0xf1   : > { %1759 = vst.msk [vmem:[#allocation3 + $0x7c] sm:$0xf] %vm1727_vm15, %v1686_v31  ;;  %v1631_v22 = vunpack.c.l.b16 %v1578_v34  ;;  %v1632_v36 = vunpack.c.h.b16 %v1578_v34  ;;  %3143 = vmatmul.msk.bf16.gmra.mxu0 %vm1883_vm0, %v3338_v2  ;;  %v3372_v41 = vld [vmem:[#allocation3 + $0x28] sm:$0xff] }
  0xf2   : > { %v3356_v42 = vld [vmem:[#allocation3 + $0x28] sm:$0xff] }
  0xf3   : > { %v1667_v30 = vpack.c.b16 %v1631_v22, %v1631_v22  ;;  %v1668_v37 = vpack.c.b16 %v1632_v36, %v1632_v36  ;;  %v3340_v25 = vld [vmem:[#allocation3 + $0x28] sm:$0xff] }
  0xf5   : > { %1740 = vst.msk [vmem:[#allocation3 + $0x30] sm:$0xf] %vm1727_vm15, %v1667_v30 }
  0xf6   : > { %1741 = vst.msk [vmem:[#allocation3 + $0x34] sm:$0xf] %vm1727_vm15, %v1668_v37 }
  0xf8   : > { %v3350_v38 = vld [vmem:[#allocation3 + $0x78] sm:$0xff]  ;;  %v1365_v55 = vpop.permute.xlu2 %1364 }
  0xf9   : > { %3155 = vmatmul.msk.bf16.gmra.mxu3 %vm1883_vm0, %v3350_v38  ;;  %3315 = vmatmul.msk.bf16.gmra.mxu2 %vm1883_vm0, %v3372_v41  ;;  %v1547_v13 = vsel %vm1527_vm14, %v4080_v6, %v1365_v55  ;;  %v3366_v33 = vld [vmem:[#allocation3 + $0x78] sm:$0xff] }
  0xfa   : > { %v1361_v44 = vpop.permute.xlu1 %1360 }
  0xfb   : > { %v1543_v45 = vsel %vm1527_vm14, %v4005_v0, %v1361_v44 }
  0xfc   : > { %3230 = vmatmul.msk.bf16.gmra.mxu1 %vm1883_vm0, %v3356_v42  ;;  %v1580_v46 = vsel %vm1564_vm13, %v1543_v45, %v1506_v43 }
  0xfd   : > { %v1633_v47 = vunpack.c.l.b16 %v1580_v46  ;;  %v1634_v17 = vunpack.c.h.b16 %v1580_v46  ;;  %v3373_v54 = vld [vmem:[#allocation3 + $0x30] sm:$0xff] }
  0xfe   : > { %v3341_v19 = vld [vmem:[#allocation3 + $0x30] sm:$0xff] }
  0xff   : > { %v1363_v48 = vpop.permute.xlu0 %1362  ;;  %v1669_v4 = vpack.c.b16 %v1633_v47, %v1633_v47  ;;  %v1670_v51 = vpack.c.b16 %v1634_v17, %v1634_v17 }
 0x100   : > { %v1545_v52 = vsel %vm1527_vm14, %v4025_v29, %v1363_v48  ;;  %v3357_v29 = vld [vmem:[#allocation3 + $0x30] sm:$0xff]  ;;  %v1524_v63 = vpop.permute.xlu2 %1523 }
 0x101   : > { %3144 = vmatmul.msk.bf16.gmra.mxu0 %vm1883_vm0, %v3339_v50  ;;  %1742 = vst.msk [vmem:[#allocation3 + $0x38] sm:$0xf] %vm1727_vm15, %v1669_v4 }
 0x102   : > { %1743 = vst.msk [vmem:[#allocation3 + $0x3c] sm:$0xf] %vm1727_vm15, %v1670_v51  ;;  %v1508_v0 = vpop.permute.xlu1 %1507  ;;  %v3381_v51 = vld [vmem:[#allocation3 + $0x70] sm:$0xff] }
 0x103   : > { %v1582_v27 = vsel %vm1564_vm13, %v1545_v52, %v1508_v0 }
 0x104   : > { %v1635_v58 = vunpack.c.l.b16 %v1582_v27  ;;  %v1636_v59 = vunpack.c.h.b16 %v1582_v27 }
 0x106   : > { %v1671_v61 = vpack.c.b16 %v1635_v58, %v1635_v58  ;;  %v1672_v62 = vpack.c.b16 %v1636_v59, %v1636_v59 }
 0x107   : > { %v1379_v53 = vpop.permute.xlu0 %1378 }
 0x108   : > { %1744 = vst.msk [vmem:[#allocation3 + $0x40] sm:$0xf] %vm1727_vm15, %v1671_v61  ;;  %v1561_v3 = vsel %vm1527_vm14, %v4059_v40, %v1379_v53 }
 0x109   : > { %3238 = vmatmul.msk.bf16.vlgmr.msrb.gmra.mxu3 %vm1883_vm0, %v3364_v60  ;;  %3316 = vmatmul.msk.bf16.gmra.mxu2 %vm1883_vm0, %v3373_v54  ;;  %1745 = vst.msk [vmem:[#allocation3 + $0x44] sm:$0xf] %vm1727_vm15, %v1672_v62  ;;  %v1598_v7 = vsel %vm1564_vm13, %v1561_v3, %v1524_v63  ;;  %v3374_v14 = vld [vmem:[#allocation3 + $0x38] sm:$0xff] }
 0x10a   : > { %v1651_v8 = vunpack.c.l.b16 %v1598_v7  ;;  %v1652_v10 = vunpack.c.h.b16 %v1598_v7  ;;  %v3358_v18 = vld [vmem:[#allocation3 + $0x38] sm:$0xff] }
 0x10b   : > { %v3342_v35 = vld [vmem:[#allocation3 + $0x38] sm:$0xff] }
 0x10c   : > { %3231 = vmatmul.msk.bf16.gmra.mxu1 %vm1883_vm0, %v3357_v29  ;;  %v1687_v11 = vpack.c.b16 %v1651_v8, %v1651_v8  ;;  %v1688_v12 = vpack.c.b16 %v1652_v10, %v1652_v10 }
 0x10e   : > { %1760 = vst.msk [vmem:[#allocation3 + $0x80] sm:$0xf] %vm1727_vm15, %v1687_v11  ;;  %v1510_v15 = vpop.permute.xlu1 %1509 }
 0x10f   : > { %1761 = vst.msk [vmem:[#allocation3 + $0x84] sm:$0xf] %vm1727_vm15, %v1688_v12  ;;  %v1584_v40 = vsel %vm1564_vm13, %v1547_v13, %v1510_v15 }
 0x110   : > { %v1637_v26 = vunpack.c.l.b16 %v1584_v40  ;;  %v1638_v56 = vunpack.c.h.b16 %v1584_v40  ;;  %v3375_v39 = vld [vmem:[#allocation3 + $0x40] sm:$0xff] }
 0x111   : > { %3145 = vmatmul.msk.bf16.gmra.mxu0 %vm1883_vm0, %v3340_v25  ;;  %v3359_v2 = vld [vmem:[#allocation3 + $0x40] sm:$0xff] }
 0x112   : > { %v1673_v16 = vpack.c.b16 %v1637_v26, %v1637_v26  ;;  %v1674_v49 = vpack.c.b16 %v1638_v56, %v1638_v56  ;;  %v3343_v46 = vld [vmem:[#allocation3 + $0x40] sm:$0xff]  ;;  %v3382_v26 = vld [vmem:[#allocation3 + $0x78] sm:$0xff] }
 0x114   : > { %1746 = vst.msk [vmem:[#allocation3 + $0x48] sm:$0xf] %vm1727_vm15, %v1673_v16 }
 0x115   : > { %1747 = vst.msk [vmem:[#allocation3 + $0x4c] sm:$0xf] %vm1727_vm15, %v1674_v49  ;;  %v1367_v9 = vpop.permute.xlu0 %1366 }
 0x116   : > { %v1512_v6 = vpop.permute.xlu1 %1511  ;;  %v1549_v1 = vsel %vm1527_vm14, %v4110_v57, %v1367_v9  ;;  %v3367_v43 = vld [vmem:[#allocation3 + $0x80] sm:$0xff] }
 0x117   : > { %v1586_v32 = vsel %vm1564_vm13, %v1549_v1, %v1512_v6 }
 0x118   : > { %v1639_v23 = vunpack.c.l.b16 %v1586_v32  ;;  %v1640_v24 = vunpack.c.h.b16 %v1586_v32 }
 0x119   : > { %3239 = vmatmul.msk.bf16.gmra.mxu3 %vm1883_vm0, %v3365_v21  ;;  %3317 = vmatmul.msk.bf16.gmra.mxu2 %vm1883_vm0, %v3374_v14 }
 0x11a   : > { %v1675_v28 = vpack.c.b16 %v1639_v23, %v1639_v23  ;;  %v1676_v31 = vpack.c.b16 %v1640_v24, %v1640_v24 }
 0x11c   : > { %3232 = vmatmul.msk.bf16.gmra.mxu1 %vm1883_vm0, %v3358_v18  ;;  %1748 = vst.msk [vmem:[#allocation3 + $0x50] sm:$0xf] %vm1727_vm15, %v1675_v28  ;;  %v3376_v42 = vld [vmem:[#allocation3 + $0x48] sm:$0xff] }
 0x11d   : > { %1749 = vst.msk [vmem:[#allocation3 + $0x54] sm:$0xf] %vm1727_vm15, %v1676_v31  ;;  %v3360_v44 = vld [vmem:[#allocation3 + $0x48] sm:$0xff] }
 0x11e   : > { %v3344_v61 = vld [vmem:[#allocation3 + $0x48] sm:$0xff] }
 0x121   : > { %3146 = vmatmul.msk.bf16.gmra.mxu0 %vm1883_vm0, %v3341_v19 }
 0x122   : > { %v1514_v22 = vpop.permute.xlu0 %1513 }
 0x124   : > { %v3377_v17 = vld [vmem:[#allocation3 + $0x50] sm:$0xff] }
 0x125   : > { %v1369_v57 = vpop.permute.xlu2 %1368  ;;  %v3361_v0 = vld [vmem:[#allocation3 + $0x50] sm:$0xff] }
 0x126   : > { %v1551_v34 = vsel %vm1527_vm14, %v4140_v5, %v1369_v57 }
 0x127   : > { %v1588_v36 = vsel %vm1564_vm13, %v1551_v34, %v1514_v22 }
 0x128   : > { %v1641_v30 = vunpack.c.l.b16 %v1588_v36  ;;  %v1642_v37 = vunpack.c.h.b16 %v1588_v36 }
 0x129   : > { %3240 = vmatmul.msk.bf16.gmra.mxu3 %vm1883_vm0, %v3366_v33  ;;  %3318 = vmatmul.msk.bf16.gmra.mxu2 %vm1883_vm0, %v3375_v39  ;;  %v3345_v39 = vld [vmem:[#allocation3 + $0x50] sm:$0xff] }
 0x12a   : > { %v1677_v38 = vpack.c.b16 %v1641_v30, %v1641_v30  ;;  %v1678_v41 = vpack.c.b16 %v1642_v37, %v1642_v37 }
 0x12c   : > { %3233 = vmatmul.msk.bf16.gmra.mxu1 %vm1883_vm0, %v3359_v2  ;;  %1750 = vst.msk [vmem:[#allocation3 + $0x58] sm:$0xf] %vm1727_vm15, %v1677_v38 }
 0x12d   : > { %1751 = vst.msk [vmem:[#allocation3 + $0x5c] sm:$0xf] %vm1727_vm15, %v1678_v41 }
 0x12e   : > { %v1526_v59 = vpop.permute.xlu2 %1525 }
 0x131   : > { %3147 = vmatmul.msk.bf16.gmra.mxu0 %vm1883_vm0, %v3342_v35 }
 0x134   : > { %v3378_v13 = vld [vmem:[#allocation3 + $0x58] sm:$0xff] }
 0x135   : > { %v3362_v19 = vld [vmem:[#allocation3 + $0x58] sm:$0xff] }
 0x139   : > { %3241 = vmatmul.msk.bf16.gmra.mxu3 %vm1883_vm0, %v3367_v43  ;;  %3319 = vmatmul.msk.bf16.gmra.mxu2 %vm1883_vm0, %v3376_v42  ;;  %v2241_v5 = vpop.f32.mrf.mxu1  ;;  %v3383_v42 = vld [vmem:[#allocation3 + $0x80] sm:$0xff] }
 0x13c   : > { %3234 = vmatmul.msk.bf16.gmra.mxu1 %vm1883_vm0, %v3360_v44 }
 0x13e   : > { %v1948_v45 = vpop.f32.mrf.mxu0 }
 0x13f   : > { %2029 = vst.msk [vmem:[#allocation4] sm:$0xff] %vm2028_vm1, %v1948_v45 }
 0x141   : > { %3148 = vmatmul.msk.bf16.gmra.mxu0 %vm1883_vm0, %v3343_v46  ;;  %v2243_v47 = vpop.f32.mrf.mxu1  ;;  %v1381_v29 = vpop.permute.xlu1 %1380 }
 0x142   : > { %v1563_v53 = vsel %vm1527_vm14, %v4188_v20, %v1381_v29  ;;  %v4302_v20 = vld [vmem:[%s4546_s3] ss:$0 sm:$0xff] }
 0x143   : > { %v1600_v25 = vsel %vm1564_vm13, %v1563_v53, %v1526_v59 }
 0x144   : > { %v1653_v8 = vunpack.c.l.b16 %v1600_v25  ;;  %v1654_v10 = vunpack.c.h.b16 %v1600_v25 }
 0x146   : > { %v2321_v48 = vld [vmem:[#allocation4] sm:$0xff]  ;;  %v1950_v50 = vpop.f32.mrf.mxu0  ;;  %v2008_v52 = vpop.f32.mrf.mxu3  ;;  %v1689_v12 = vpack.c.b16 %v1653_v8, %v1653_v8  ;;  %v1690_v40 = vpack.c.b16 %v1654_v10, %v1654_v10  ;;  %v3380_v10 = vld [vmem:[#allocation3 + $0x68] sm:$0xff] }
 0x147   : > { %v2353_v4 = vadd.f32 %v2321_v48, %v2241_v5  ;;  %2030 = vst.msk [vmem:[#allocation4 + $0x8] sm:$0xff] %vm2028_vm1, %v1950_v50  ;;  %v3379_v5 = vld [vmem:[#allocation3 + $0x60] sm:$0xff] }
 0x148   : > { %2053 = vst.msk [vmem:[#allocation4 + $0xc0] sm:$0xff] %vm2028_vm1, %v2008_v52  ;;  %v3363_v48 = vld [vmem:[#allocation3 + $0x60] sm:$0xff] }
 0x149   : > { %2385 = vst.msk [vmem:[#allocation4] sm:$0xff] %vm2028_vm1, %v2353_v4  ;;  %3324 = vmatmul.msk.bf16.vlgmr.msra.gmra.mxu3 %vm1883_vm0, %v3381_v51  ;;  %3320 = vmatmul.msk.bf16.gmra.mxu2 %vm1883_vm0, %v3377_v17  ;;  %v2246_v55 = vpop.f32.mrf.mxu1 }
 0x14a   : > { %1762 = vst.msk [vmem:[#allocation3 + $0x88] sm:$0xf] %vm1727_vm15, %v1689_v12 }
 0x14b   : > { %1763 = vst.msk [vmem:[#allocation3 + $0x8c] sm:$0xf] %vm1727_vm15, %v1690_v40 }
 0x14c   : > { %v2597_v27 = vpop.f32.mrf.mxu2  ;;  %3235 = vmatmul.msk.bf16.gmra.mxu1 %vm1883_vm0, %v3361_v0 }
 0x14e   : > { %v2322_v54 = vld [vmem:[#allocation4 + $0x8] sm:$0xff]  ;;  %v1953_v58 = vpop.f32.mrf.mxu0  ;;  %v2010_v62 = vpop.f32.mrf.mxu3 }
 0x14f   : > { %v2354_v60 = vadd.f32 %v2322_v54, %v2243_v47  ;;  %2031 = vst.msk [vmem:[#allocation4 + $0x10] sm:$0xff] %vm2028_vm1, %v1953_v58  ;;  %v3346_v54 = vld [vmem:[#allocation3 + $0x58] sm:$0xff] }
 0x150   : > { %v2677_v63 = vld [vmem:[#allocation4] sm:$0xff]  ;;  %2054 = vst.msk [vmem:[#allocation4 + $0xc8] sm:$0xff] %vm2028_vm1, %v2010_v62 }
 0x151   : > { %2386 = vst.msk [vmem:[#allocation4 + $0x8] sm:$0xff] %vm2028_vm1, %v2354_v60  ;;  %v2709_v3 = vadd.f32 %v2677_v63, %v2597_v27  ;;  %3149 = vmatmul.msk.bf16.gmra.mxu0 %vm1883_vm0, %v3344_v61  ;;  %v2248_v7 = vpop.f32.mrf.mxu1 }
 0x152   : > { %v3384_v53 = vld [vmem:[#allocation3 + $0x88] sm:$0xff] }
 0x153   : > { %2741 = vst.msk [vmem:[#allocation4] sm:$0xff] %vm2028_vm1, %v2709_v3 }
 0x154   : > { %v2599_v11 = vpop.f32.mrf.mxu2 }
 0x156   : > { %v2323_v14 = vld [vmem:[#allocation4 + $0x10] sm:$0xff]  ;;  %v1955_v15 = vpop.f32.mrf.mxu0  ;;  %v2013_v56 = vpop.f32.mrf.mxu3 }
 0x157   : > { %v2355_v21 = vadd.f32 %v2323_v14, %v2246_v55  ;;  %2032 = vst.msk [vmem:[#allocation4 + $0x18] sm:$0xff] %vm2028_vm1, %v1955_v15 }
 0x158   : > { %v2678_v16 = vld [vmem:[#allocation4 + $0x8] sm:$0xff]  ;;  %2055 = vst.msk [vmem:[#allocation4 + $0xd0] sm:$0xff] %vm2028_vm1, %v2013_v56 }
 0x159   : > { %2387 = vst.msk [vmem:[#allocation4 + $0x10] sm:$0xff] %vm2028_vm1, %v2355_v21  ;;  %v2710_v49 = vadd.f32 %v2678_v16, %v2599_v11  ;;  %3325 = vmatmul.msk.bf16.gmra.mxu3 %vm1883_vm0, %v3382_v26  ;;  %3321 = vmatmul.msk.bf16.gmra.mxu2 %vm1883_vm0, %v3378_v13  ;;  %v2251_v6 = vpop.f32.mrf.mxu1 }
 0x15a   : > { %v2773_v18 = vld [vmem:[#allocation4] sm:$0xff] }
 0x15b   : > { %v2809_v9 = vadd.f32 %v4302_v20, %v2773_v18  ;;  %2742 = vst.msk [vmem:[#allocation4 + $0x8] sm:$0xff] %vm2028_vm1, %v2710_v49 }
 0x15c   : > { %v2602_v1 = vpop.f32.mrf.mxu2  ;;  %3236 = vmatmul.msk.bf16.gmra.mxu1 %vm1883_vm0, %v3362_v19 }
 0x15d   : > { %v2841_v32 = vmax.f32 %v2809_v9, 0.0 }
 0x15e   : > { %v2324_v23 = vld [vmem:[#allocation4 + $0x18] sm:$0xff]  ;;  %v1958_v24 = vpop.f32.mrf.mxu0  ;;  %v2015_v33 = vpop.f32.mrf.mxu3 }
 0x15f   : > { %v2873_v28 = vpack.c.bf16 %v2841_v32, %v2841_v32  ;;  %v2356_v31 = vadd.f32 %v2324_v23, %v2248_v7  ;;  %2033 = vst.msk [vmem:[#allocation4 + $0x20] sm:$0xff] %vm2028_vm1, %v1958_v24 }
 0x160   : > { %v2679_v2 = vld [vmem:[#allocation4 + $0x10] sm:$0xff]  ;;  %2056 = vst.msk [vmem:[#allocation4 + $0xd8] sm:$0xff] %vm2028_vm1, %v2015_v33 }
 0x161   : > { %2906 = vst.msk [vmem:[%s4318_s14] sm:$0xf] %vm2905_vm2, %v2873_v28  ;;  %v2711_v57 = vadd.f32 %v2679_v2, %v2602_v1  ;;  %3150 = vmatmul.msk.bf16.gmra.mxu0 %vm1883_vm0, %v3345_v39  ;;  %v2253_v35 = vpop.f32.mrf.mxu1 }
 0x162   : > { %v2774_v34 = vld [vmem:[#allocation4 + $0x8] sm:$0xff]  ;;  %2388 = vst.msk [vmem:[#allocation4 + $0x18] sm:$0xff] %vm2028_vm1, %v2356_v31 }
 0x163   : > { %v2810_v22 = vadd.f32 %v4302_v20, %v2774_v34  ;;  %2743 = vst.msk [vmem:[#allocation4 + $0x10] sm:$0xff] %vm2028_vm1, %v2711_v57 }
 0x164   : > { %v2604_v36 = vpop.f32.mrf.mxu2 }
 0x165   : > { %v2842_v30 = vmax.f32 %v2810_v22, 0.0 }
 0x166   : > { %v2325_v37 = vld [vmem:[#allocation4 + $0x20] sm:$0xff]  ;;  %v1960_v38 = vpop.f32.mrf.mxu0 }
 0x167   : > { %v2874_v41 = vpack.c.bf16 %v2842_v30, %v2842_v30  ;;  %v2357_v43 = vadd.f32 %v2325_v37, %v2251_v6  ;;  %2034 = vst.msk [vmem:[#allocation4 + $0x28] sm:$0xff] %vm2028_vm1, %v1960_v38  ;;  %v2345_v38 = vld [vmem:[#allocation4 + $0xc0] sm:$0xff] }
 0x169   : > { %2907 = vst.msk [vmem:[%s4318_s14 + $0x4] sm:$0xf] %vm2905_vm2, %v2874_v41  ;;  %v2680_v44 = vld [vmem:[#allocation4 + $0x18] sm:$0xff]  ;;  %3326 = vmatmul.msk.bf16.gmra.mxu3 %vm1883_vm0, %v3383_v42  ;;  %3322 = vmatmul.msk.bf16.gmra.mxu2 %vm1883_vm0, %v3379_v5  ;;  %v2256_v47 = vpop.f32.mrf.mxu1 }
 0x16a   : > { %v2775_v45 = vld [vmem:[#allocation4 + $0x10] sm:$0xff]  ;;  %2389 = vst.msk [vmem:[#allocation4 + $0x20] sm:$0xff] %vm2028_vm1, %v2357_v43  ;;  %v2712_v46 = vadd.f32 %v2680_v44, %v2604_v36 }
 0x16b   : > { %v2811_v17 = vadd.f32 %v4302_v20, %v2775_v45 }
 0x16c   : > { %2744 = vst.msk [vmem:[#allocation4 + $0x18] sm:$0xff] %vm2028_vm1, %v2712_v46  ;;  %v2018_v50 = vpop.f32.mrf.mxu3  ;;  %v2607_v4 = vpop.f32.mrf.mxu2  ;;  %3237 = vmatmul.msk.bf16.gmra.mxu1 %vm1883_vm0, %v3363_v48 }
 0x16d   : > { %v2843_v51 = vmax.f32 %v2811_v17, 0.0  ;;  %2057 = vst.msk [vmem:[#allocation4 + $0xe0] sm:$0xff] %vm2028_vm1, %v2018_v50 }
 0x16e   : > { %v2326_v52 = vld [vmem:[#allocation4 + $0x28] sm:$0xff]  ;;  %v1963_v55 = vpop.f32.mrf.mxu0 }
 0x16f   : > { %v2875_v0 = vpack.c.bf16 %v2843_v51, %v2843_v51  ;;  %v2358_v27 = vadd.f32 %v2326_v52, %v2253_v35  ;;  %2035 = vst.msk [vmem:[#allocation4 + $0x30] sm:$0xff] %vm2028_vm1, %v1963_v55  ;;  %v2346_v52 = vld [vmem:[#allocation4 + $0xc8] sm:$0xff] }
 0x171   : > { %2908 = vst.msk [vmem:[%s4318_s14 + $0x8] sm:$0xf] %vm2905_vm2, %v2875_v0  ;;  %v2681_v58 = vld [vmem:[#allocation4 + $0x20] sm:$0xff]  ;;  %3151 = vmatmul.msk.bf16.gmra.mxu0 %vm1883_vm0, %v3346_v54  ;;  %v2258_v60 = vpop.f32.mrf.mxu1 }
 0x172   : > { %2390 = vst.msk [vmem:[#allocation4 + $0x28] sm:$0xff] %vm2028_vm1, %v2358_v27  ;;  %v2713_v59 = vadd.f32 %v2681_v58, %v2607_v4 }
 0x173   : > { %v2776_v61 = vld [vmem:[#allocation4 + $0x18] sm:$0xff] }
 0x174   : > { %v2812_v62 = vadd.f32 %v4302_v20, %v2776_v61  ;;  %2745 = vst.msk [vmem:[#allocation4 + $0x20] sm:$0xff] %vm2028_vm1, %v2713_v59  ;;  %v2020_v29 = vpop.f32.mrf.mxu3  ;;  %v2609_v63 = vpop.f32.mrf.mxu2 }
 0x175   : > { %2058 = vst.msk [vmem:[#allocation4 + $0xe8] sm:$0xff] %vm2028_vm1, %v2020_v29 }
 0x176   : > { %v2844_v3 = vmax.f32 %v2812_v62, 0.0  ;;  %v2327_v25 = vld [vmem:[#allocation4 + $0x30] sm:$0xff]  ;;  %v1965_v7 = vpop.f32.mrf.mxu0 }
 0x177   : > { %v2359_v8 = vadd.f32 %v2327_v25, %v2256_v47  ;;  %2036 = vst.msk [vmem:[#allocation4 + $0x38] sm:$0xff] %vm2028_vm1, %v1965_v7  ;;  %v2347_v25 = vld [vmem:[#allocation4 + $0xd0] sm:$0xff] }
 0x178   : > { %v2876_v11 = vpack.c.bf16 %v2844_v3, %v2844_v3 }
 0x179   : > { %2391 = vst.msk [vmem:[#allocation4 + $0x30] sm:$0xff] %vm2028_vm1, %v2359_v8  ;;  %v2682_v12 = vld [vmem:[#allocation4 + $0x28] sm:$0xff]  ;;  %3327 = vmatmul.msk.bf16.gmra.mxu3 %vm1883_vm0, %v3384_v53  ;;  %3323 = vmatmul.msk.bf16.gmra.mxu2 %vm1883_vm0, %v3380_v10  ;;  %v2261_v14 = vpop.f32.mrf.mxu1 }
 0x17a   : > { %2909 = vst.msk [vmem:[%s4318_s14 + $0xc] sm:$0xf] %vm2905_vm2, %v2876_v11  ;;  %v2714_v13 = vadd.f32 %v2682_v12, %v2609_v63 }
 0x17b   : > { %v2777_v15 = vld [vmem:[#allocation4 + $0x20] sm:$0xff] }
 0x17c   : > { %v2813_v40 = vadd.f32 %v4302_v20, %v2777_v15  ;;  %2746 = vst.msk [vmem:[#allocation4 + $0x28] sm:$0xff] %vm2028_vm1, %v2714_v13  ;;  %v2023_v21 = vpop.f32.mrf.mxu3  ;;  %v2612_v26 = vpop.f32.mrf.mxu2 }
 0x17d   : > { %2059 = vst.msk [vmem:[#allocation4 + $0xf0] sm:$0xff] %vm2028_vm1, %v2023_v21 }
 0x17e   : > { %v2845_v56 = vmax.f32 %v2813_v40, 0.0  ;;  %v2328_v16 = vld [vmem:[#allocation4 + $0x38] sm:$0xff]  ;;  %v1968_v49 = vpop.f32.mrf.mxu0 }
 0x17f   : > { %v2360_v18 = vadd.f32 %v2328_v16, %v2258_v60  ;;  %2037 = vst.msk [vmem:[#allocation4 + $0x40] sm:$0xff] %vm2028_vm1, %v1968_v49  ;;  %v2348_v49 = vld [vmem:[#allocation4 + $0xd8] sm:$0xff] }
 0x180   : > { %v2877_v6 = vpack.c.bf16 %v2845_v56, %v2845_v56  ;;  %v2683_v9 = vld [vmem:[#allocation4 + $0x30] sm:$0xff] }
 0x181   : > { %2392 = vst.msk [vmem:[#allocation4 + $0x38] sm:$0xff] %vm2028_vm1, %v2360_v18  ;;  %v2715_v19 = vadd.f32 %v2683_v9, %v2612_v26  ;;  %v2263_v1 = vpop.f32.mrf.mxu1 }
 0x182   : > { %2910 = vst.msk [vmem:[%s4318_s14 + $0x10] sm:$0xf] %vm2905_vm2, %v2877_v6 }
 0x183   : > { %v2778_v32 = vld [vmem:[#allocation4 + $0x28] sm:$0xff]  ;;  %2747 = vst.msk [vmem:[#allocation4 + $0x30] sm:$0xff] %vm2028_vm1, %v2715_v19 }
 0x184   : > { %v2814_v23 = vadd.f32 %v4302_v20, %v2778_v32  ;;  %v2025_v24 = vpop.f32.mrf.mxu3  ;;  %v2614_v28 = vpop.f32.mrf.mxu2 }
 0x185   : > { %2060 = vst.msk [vmem:[#allocation4 + $0xf8] sm:$0xff] %vm2028_vm1, %v2025_v24 }
 0x186   : > { %v2846_v31 = vmax.f32 %v2814_v23, 0.0  ;;  %v2329_v39 = vld [vmem:[#allocation4 + $0x40] sm:$0xff]  ;;  %v1970_v33 = vpop.f32.mrf.mxu0 }
 0x187   : > { %v2361_v2 = vadd.f32 %v2329_v39, %v2261_v14  ;;  %2038 = vst.msk [vmem:[#allocation4 + $0x48] sm:$0xff] %vm2028_vm1, %v1970_v33 }
 0x188   : > { %v2878_v57 = vpack.c.bf16 %v2846_v31, %v2846_v31  ;;  %v2684_v34 = vld [vmem:[#allocation4 + $0x38] sm:$0xff] }
 0x189   : > { %2393 = vst.msk [vmem:[#allocation4 + $0x40] sm:$0xff] %vm2028_vm1, %v2361_v2  ;;  %v2716_v35 = vadd.f32 %v2684_v34, %v2614_v28  ;;  %v2266_v36 = vpop.f32.mrf.mxu1 }
 0x18a   : > { %2911 = vst.msk [vmem:[%s4318_s14 + $0x14] sm:$0xf] %vm2905_vm2, %v2878_v57  ;;  %v2779_v22 = vld [vmem:[#allocation4 + $0x30] sm:$0xff]  ;;  %v2349_v57 = vld [vmem:[#allocation4 + $0xe0] sm:$0xff] }
 0x18b   : > { %v2815_v30 = vadd.f32 %v4302_v20, %v2779_v22  ;;  %2748 = vst.msk [vmem:[#allocation4 + $0x38] sm:$0xff] %vm2028_vm1, %v2716_v35 }
 0x18c   : > { %v2301_v37 = vpop.f32.mrf.mxu3  ;;  %v2617_v41 = vpop.f32.mrf.mxu2 }
 0x18d   : > { %v2847_v43 = vmax.f32 %v2815_v30, 0.0  ;;  %v2377_v42 = vadd.f32 %v2345_v38, %v2301_v37 }
 0x18e   : > { %v2330_v5 = vld [vmem:[#allocation4 + $0x48] sm:$0xff]  ;;  %v1973_v44 = vpop.f32.mrf.mxu0 }
 0x18f   : > { %v2879_v45 = vpack.c.bf16 %v2847_v43, %v2847_v43  ;;  %v2362_v46 = vadd.f32 %v2330_v5, %v2263_v1  ;;  %2409 = vst.msk [vmem:[#allocation4 + $0xc0] sm:$0xff] %vm2028_vm1, %v2377_v42 }
 0x190   : > { %v2685_v47 = vld [vmem:[#allocation4 + $0x40] sm:$0xff]  ;;  %2039 = vst.msk [vmem:[#allocation4 + $0x50] sm:$0xff] %vm2028_vm1, %v1973_v44 }
 0x191   : > { %2912 = vst.msk [vmem:[%s4318_s14 + $0x18] sm:$0xf] %vm2905_vm2, %v2879_v45  ;;  %v2717_v17 = vadd.f32 %v2685_v47, %v2617_v41  ;;  %v2268_v50 = vpop.f32.mrf.mxu1 }
 0x192   : > { %v2780_v48 = vld [vmem:[#allocation4 + $0x38] sm:$0xff]  ;;  %2394 = vst.msk [vmem:[#allocation4 + $0x48] sm:$0xff] %vm2028_vm1, %v2362_v46  ;;  %v2350_v46 = vld [vmem:[#allocation4 + $0xe8] sm:$0xff] }
 0x193   : > { %v2816_v4 = vadd.f32 %v4302_v20, %v2780_v48  ;;  %2749 = vst.msk [vmem:[#allocation4 + $0x40] sm:$0xff] %vm2028_vm1, %v2717_v17 }
 0x194   : > { %v2303_v51 = vpop.f32.mrf.mxu3  ;;  %v2619_v55 = vpop.f32.mrf.mxu2 }
 0x195   : > { %v2848_v0 = vmax.f32 %v2816_v4, 0.0  ;;  %v2378_v27 = vadd.f32 %v2346_v52, %v2303_v51 }
 0x196   : > { %v1975_v54 = vpop.f32.mrf.mxu0 }
 0x197   : > { %v2880_v58 = vpack.c.bf16 %v2848_v0, %v2848_v0  ;;  %v2331_v59 = vld [vmem:[#allocation4 + $0x50] sm:$0xff]  ;;  %2410 = vst.msk [vmem:[#allocation4 + $0xc8] sm:$0xff] %vm2028_vm1, %v2378_v27 }
 0x198   : > { %v2363_v60 = vadd.f32 %v2331_v59, %v2266_v36  ;;  %2040 = vst.msk [vmem:[#allocation4 + $0x58] sm:$0xff] %vm2028_vm1, %v1975_v54  ;;  %v2351_v59 = vld [vmem:[#allocation4 + $0xf0] sm:$0xff] }
 0x199   : > { %2913 = vst.msk [vmem:[%s4318_s14 + $0x1c] sm:$0xf] %vm2905_vm2, %v2880_v58  ;;  %v2686_v61 = vld [vmem:[#allocation4 + $0x48] sm:$0xff]  ;;  %v2271_v63 = vpop.f32.mrf.mxu1 }
 0x19a   : > { %v2781_v62 = vld [vmem:[#allocation4 + $0x40] sm:$0xff]  ;;  %2395 = vst.msk [vmem:[#allocation4 + $0x50] sm:$0xff] %vm2028_vm1, %v2363_v60  ;;  %v2718_v29 = vadd.f32 %v2686_v61, %v2619_v55 }
 0x19b   : > { %v2817_v53 = vadd.f32 %v4302_v20, %v2781_v62 }
 0x19c   : > { %2750 = vst.msk [vmem:[#allocation4 + $0x48] sm:$0xff] %vm2028_vm1, %v2718_v29  ;;  %v2306_v3 = vpop.f32.mrf.mxu3  ;;  %v2622_v7 = vpop.f32.mrf.mxu2 }
 0x19d   : > { %v2849_v8 = vmax.f32 %v2817_v53, 0.0  ;;  %v2379_v10 = vadd.f32 %v2347_v25, %v2306_v3 }
 0x19e   : > { %v1978_v11 = vpop.f32.mrf.mxu0 }
 0x19f   : > { %v2881_v12 = vpack.c.bf16 %v2849_v8, %v2849_v8  ;;  %v2332_v13 = vld [vmem:[#allocation4 + $0x58] sm:$0xff]  ;;  %2411 = vst.msk [vmem:[#allocation4 + $0xd0] sm:$0xff] %vm2028_vm1, %v2379_v10 }
 0x1a0   : > { %v2364_v14 = vadd.f32 %v2332_v13, %v2268_v50  ;;  %2041 = vst.msk [vmem:[#allocation4 + $0x60] sm:$0xff] %vm2028_vm1, %v1978_v11  ;;  %v2352_v13 = vld [vmem:[#allocation4 + $0xf8] sm:$0xff] }
 0x1a1   : > { %2914 = vst.msk [vmem:[%s4318_s14 + $0x20] sm:$0xf] %vm2905_vm2, %v2881_v12  ;;  %v2687_v15 = vld [vmem:[#allocation4 + $0x50] sm:$0xff]  ;;  %v2273_v21 = vpop.f32.mrf.mxu1 }
 0x1a2   : > { %2396 = vst.msk [vmem:[#allocation4 + $0x58] sm:$0xff] %vm2028_vm1, %v2364_v14  ;;  %v2719_v40 = vadd.f32 %v2687_v15, %v2622_v7 }
 0x1a3   : > { %v2782_v26 = vld [vmem:[#allocation4 + $0x48] sm:$0xff] }
 0x1a4   : > { %v2818_v56 = vadd.f32 %v4302_v20, %v2782_v26  ;;  %2751 = vst.msk [vmem:[#allocation4 + $0x50] sm:$0xff] %vm2028_vm1, %v2719_v40  ;;  %v2308_v16 = vpop.f32.mrf.mxu3  ;;  %v2624_v18 = vpop.f32.mrf.mxu2 }
 0x1a5   : > { %v2380_v6 = vadd.f32 %v2348_v49, %v2308_v16 }
 0x1a6   : > { %v2850_v9 = vmax.f32 %v2818_v56, 0.0  ;;  %v1980_v19 = vpop.f32.mrf.mxu0 }
 0x1a7   : > { %v2333_v1 = vld [vmem:[#allocation4 + $0x60] sm:$0xff]  ;;  %2412 = vst.msk [vmem:[#allocation4 + $0xd8] sm:$0xff] %vm2028_vm1, %v2380_v6 }
 0x1a8   : > { %v2882_v32 = vpack.c.bf16 %v2850_v9, %v2850_v9  ;;  %v2365_v23 = vadd.f32 %v2333_v1, %v2271_v63  ;;  %2042 = vst.msk [vmem:[#allocation4 + $0x68] sm:$0xff] %vm2028_vm1, %v1980_v19  ;;  %v2701_v1 = vld [vmem:[#allocation4 + $0xc0] sm:$0xff] }
 0x1a9   : > { %v2688_v24 = vld [vmem:[#allocation4 + $0x58] sm:$0xff]  ;;  %v2276_v31 = vpop.f32.mrf.mxu1 }
 0x1aa   : > { %2915 = vst.msk [vmem:[%s4318_s14 + $0x24] sm:$0xf] %vm2905_vm2, %v2882_v32  ;;  %v2720_v28 = vadd.f32 %v2688_v24, %v2624_v18 }
 0x1ab   : > { %v2783_v39 = vld [vmem:[#allocation4 + $0x50] sm:$0xff]  ;;  %2397 = vst.msk [vmem:[#allocation4 + $0x60] sm:$0xff] %vm2028_vm1, %v2365_v23 }
 0x1ac   : > { %v2819_v33 = vadd.f32 %v4302_v20, %v2783_v39  ;;  %2752 = vst.msk [vmem:[#allocation4 + $0x58] sm:$0xff] %vm2028_vm1, %v2720_v28  ;;  %v2311_v2 = vpop.f32.mrf.mxu3  ;;  %v2627_v34 = vpop.f32.mrf.mxu2 }
 0x1ad   : > { %v2381_v35 = vadd.f32 %v2349_v57, %v2311_v2 }
 0x1ae   : > { %v2851_v22 = vmax.f32 %v2819_v33, 0.0  ;;  %v1983_v36 = vpop.f32.mrf.mxu0 }
 0x1af   : > { %v2334_v30 = vld [vmem:[#allocation4 + $0x68] sm:$0xff]  ;;  %2413 = vst.msk [vmem:[#allocation4 + $0xe0] sm:$0xff] %vm2028_vm1, %v2381_v35 }
 0x1b0   : > { %v2883_v37 = vpack.c.bf16 %v2851_v22, %v2851_v22  ;;  %v2366_v38 = vadd.f32 %v2334_v30, %v2273_v21  ;;  %2043 = vst.msk [vmem:[#allocation4 + $0x70] sm:$0xff] %vm2028_vm1, %v1983_v36 }
 0x1b1   : > { %v2278_v43 = vpop.f32.mrf.mxu1 }
 0x1b2   : > { %2916 = vst.msk [vmem:[%s4318_s14 + $0x28] sm:$0xf] %vm2905_vm2, %v2883_v37  ;;  %v2689_v41 = vld [vmem:[#allocation4 + $0x60] sm:$0xff]  ;;  %v2702_v37 = vld [vmem:[#allocation4 + $0xc8] sm:$0xff] }
 0x1b3   : > { %v2784_v42 = vld [vmem:[#allocation4 + $0x58] sm:$0xff]  ;;  %2398 = vst.msk [vmem:[#allocation4 + $0x68] sm:$0xff] %vm2028_vm1, %v2366_v38  ;;  %v2721_v5 = vadd.f32 %v2689_v41, %v2627_v34 }
 0x1b4   : > { %v2820_v44 = vadd.f32 %v4302_v20, %v2784_v42  ;;  %v2313_v45 = vpop.f32.mrf.mxu3  ;;  %v2629_v47 = vpop.f32.mrf.mxu2 }
 0x1b5   : > { %2753 = vst.msk [vmem:[#allocation4 + $0x60] sm:$0xff] %vm2028_vm1, %v2721_v5  ;;  %v2382_v17 = vadd.f32 %v2350_v46, %v2313_v45 }
 0x1b6   : > { %v2852_v48 = vmax.f32 %v2820_v44, 0.0  ;;  %v1985_v50 = vpop.f32.mrf.mxu0 }
 0x1b7   : > { %v2335_v4 = vld [vmem:[#allocation4 + $0x70] sm:$0xff]  ;;  %2414 = vst.msk [vmem:[#allocation4 + $0xe8] sm:$0xff] %vm2028_vm1, %v2382_v17 }
 0x1b8   : > { %v2884_v51 = vpack.c.bf16 %v2852_v48, %v2852_v48  ;;  %v2367_v52 = vadd.f32 %v2335_v4, %v2276_v31  ;;  %2044 = vst.msk [vmem:[#allocation4 + $0x78] sm:$0xff] %vm2028_vm1, %v1985_v50 }
 0x1b9   : > { %v2281_v0 = vpop.f32.mrf.mxu1 }
 0x1ba   : > { %2917 = vst.msk [vmem:[%s4318_s14 + $0x2c] sm:$0xf] %vm2905_vm2, %v2884_v51  ;;  %v2690_v55 = vld [vmem:[#allocation4 + $0x68] sm:$0xff] }
 0x1bb   : > { %2399 = vst.msk [vmem:[#allocation4 + $0x70] sm:$0xff] %vm2028_vm1, %v2367_v52  ;;  %v2722_v27 = vadd.f32 %v2690_v55, %v2629_v47 }
 0x1bc   : > { %v2785_v54 = vld [vmem:[#allocation4 + $0x60] sm:$0xff]  ;;  %v2316_v58 = vpop.f32.mrf.mxu3  ;;  %v2632_v60 = vpop.f32.mrf.mxu2 }
 0x1bd   : > { %v2821_v61 = vadd.f32 %v4302_v20, %v2785_v54  ;;  %2754 = vst.msk [vmem:[#allocation4 + $0x68] sm:$0xff] %vm2028_vm1, %v2722_v27  ;;  %v2383_v62 = vadd.f32 %v2351_v59, %v2316_v58  ;;  %v2703_v27 = vld [vmem:[#allocation4 + $0xd0] sm:$0xff] }
 0x1be   : > { %v1988_v29 = vpop.f32.mrf.mxu0 }
 0x1bf   : > { %v2853_v63 = vmax.f32 %v2821_v61, 0.0  ;;  %v2336_v53 = vld [vmem:[#allocation4 + $0x78] sm:$0xff]  ;;  %2415 = vst.msk [vmem:[#allocation4 + $0xf0] sm:$0xff] %vm2028_vm1, %v2383_v62 }
 0x1c0   : > { %v2368_v3 = vadd.f32 %v2336_v53, %v2278_v43  ;;  %2045 = vst.msk [vmem:[#allocation4 + $0x80] sm:$0xff] %vm2028_vm1, %v1988_v29 }
 0x1c1   : > { %v2885_v25 = vpack.c.bf16 %v2853_v63, %v2853_v63  ;;  %v2283_v10 = vpop.f32.mrf.mxu1 }
 0x1c2   : > { %2400 = vst.msk [vmem:[#allocation4 + $0x78] sm:$0xff] %vm2028_vm1, %v2368_v3  ;;  %v2691_v7 = vld [vmem:[#allocation4 + $0x70] sm:$0xff] }
 0x1c3   : > { %2918 = vst.msk [vmem:[%s4318_s14 + $0x30] sm:$0xf] %vm2905_vm2, %v2885_v25  ;;  %v2723_v8 = vadd.f32 %v2691_v7, %v2632_v60 }
 0x1c4   : > { %v2786_v11 = vld [vmem:[#allocation4 + $0x68] sm:$0xff]  ;;  %v2318_v12 = vpop.f32.mrf.mxu3  ;;  %v2634_v14 = vpop.f32.mrf.mxu2 }
 0x1c5   : > { %v2822_v15 = vadd.f32 %v4302_v20, %v2786_v11  ;;  %2755 = vst.msk [vmem:[#allocation4 + $0x70] sm:$0xff] %vm2028_vm1, %v2723_v8  ;;  %v2384_v40 = vadd.f32 %v2352_v13, %v2318_v12 }
 0x1c6   : > { %v1990_v21 = vpop.f32.mrf.mxu0 }
 0x1c7   : > { %v2854_v26 = vmax.f32 %v2822_v15, 0.0  ;;  %v2337_v56 = vld [vmem:[#allocation4 + $0x80] sm:$0xff]  ;;  %2416 = vst.msk [vmem:[#allocation4 + $0xf8] sm:$0xff] %vm2028_vm1, %v2384_v40 }
 0x1c8   : > { %v2369_v16 = vadd.f32 %v2337_v56, %v2281_v0  ;;  %2046 = vst.msk [vmem:[#allocation4 + $0x88] sm:$0xff] %vm2028_vm1, %v1990_v21 }
 0x1c9   : > { %v2886_v49 = vpack.c.bf16 %v2854_v26, %v2854_v26  ;;  %v2692_v18 = vld [vmem:[#allocation4 + $0x78] sm:$0xff]  ;;  %v2286_v28 = vpop.f32.mrf.mxu1 }
 0x1ca   : > { %2401 = vst.msk [vmem:[#allocation4 + $0x80] sm:$0xff] %vm2028_vm1, %v2369_v16  ;;  %v2724_v6 = vadd.f32 %v2692_v18, %v2634_v14  ;;  %v2704_v14 = vld [vmem:[#allocation4 + $0xd8] sm:$0xff] }
 0x1cb   : > { %2919 = vst.msk [vmem:[%s4318_s14 + $0x34] sm:$0xf] %vm2905_vm2, %v2886_v49 }
 0x1cc   : > { %v2787_v9 = vld [vmem:[#allocation4 + $0x70] sm:$0xff]  ;;  %2756 = vst.msk [vmem:[#allocation4 + $0x78] sm:$0xff] %vm2028_vm1, %v2724_v6  ;;  %v2657_v19 = vpop.f32.mrf.mxu3  ;;  %v2637_v32 = vpop.f32.mrf.mxu2 }
 0x1cd   : > { %v2823_v23 = vadd.f32 %v4302_v20, %v2787_v9  ;;  %v2733_v24 = vadd.f32 %v2701_v1, %v2657_v19 }
 0x1ce   : > { %v1993_v31 = vpop.f32.mrf.mxu0 }
 0x1cf   : > { %v2855_v39 = vmax.f32 %v2823_v23, 0.0  ;;  %v2338_v33 = vld [vmem:[#allocation4 + $0x88] sm:$0xff]  ;;  %2765 = vst.msk [vmem:[#allocation4 + $0xc0] sm:$0xff] %vm2028_vm1, %v2733_v24 }
 0x1d0   : > { %v2370_v2 = vadd.f32 %v2338_v33, %v2283_v10  ;;  %2047 = vst.msk [vmem:[#allocation4 + $0x90] sm:$0xff] %vm2028_vm1, %v1993_v31 }
 0x1d1   : > { %v2887_v57 = vpack.c.bf16 %v2855_v39, %v2855_v39  ;;  %v2693_v34 = vld [vmem:[#allocation4 + $0x80] sm:$0xff]  ;;  %v2288_v46 = vpop.f32.mrf.mxu1 }
 0x1d2   : > { %2402 = vst.msk [vmem:[#allocation4 + $0x88] sm:$0xff] %vm2028_vm1, %v2370_v2  ;;  %v2725_v35 = vadd.f32 %v2693_v34, %v2637_v32 }
 0x1d3   : > { %2920 = vst.msk [vmem:[%s4318_s14 + $0x38] sm:$0xf] %vm2905_vm2, %v2887_v57  ;;  %v2788_v22 = vld [vmem:[#allocation4 + $0x78] sm:$0xff] }
 0x1d4   : > { %v2824_v36 = vadd.f32 %v4302_v20, %v2788_v22  ;;  %2757 = vst.msk [vmem:[#allocation4 + $0x80] sm:$0xff] %vm2028_vm1, %v2725_v35  ;;  %v2659_v30 = vpop.f32.mrf.mxu3  ;;  %v2639_v38 = vpop.f32.mrf.mxu2 }
 0x1d5   : > { %v2734_v41 = vadd.f32 %v2702_v37, %v2659_v30 }
 0x1d6   : > { %v2856_v43 = vmax.f32 %v2824_v36, 0.0  ;;  %v2797_v42 = vld [vmem:[#allocation4 + $0xc0] sm:$0xff]  ;;  %v1995_v5 = vpop.f32.mrf.mxu0 }
 0x1d7   : > { %v2833_v44 = vadd.f32 %v4302_v20, %v2797_v42  ;;  %v2339_v45 = vld [vmem:[#allocation4 + $0x90] sm:$0xff]  ;;  %2766 = vst.msk [vmem:[#allocation4 + $0xc8] sm:$0xff] %vm2028_vm1, %v2734_v41 }
 0x1d8   : > { %v2888_v47 = vpack.c.bf16 %v2856_v43, %v2856_v43  ;;  %v2371_v17 = vadd.f32 %v2339_v45, %v2286_v28  ;;  %2048 = vst.msk [vmem:[#allocation4 + $0x98] sm:$0xff] %vm2028_vm1, %v1995_v5  ;;  %v2705_v28 = vld [vmem:[#allocation4 + $0xe0] sm:$0xff] }
 0x1d9   : > { %v2865_v48 = vmax.f32 %v2833_v44, 0.0  ;;  %v2694_v50 = vld [vmem:[#allocation4 + $0x88] sm:$0xff]  ;;  %v2291_v25 = vpop.f32.mrf.mxu1 }
 0x1da   : > { %2921 = vst.msk [vmem:[%s4318_s14 + $0x3c] sm:$0xf] %vm2905_vm2, %v2888_v47  ;;  %v2726_v4 = vadd.f32 %v2694_v50, %v2639_v38  ;;  %v2706_v44 = vld [vmem:[#allocation4 + $0xe8] sm:$0xff] }
 0x1db   : > { %v2897_v51 = vpack.c.bf16 %v2865_v48, %v2865_v48  ;;  %v2789_v52 = vld [vmem:[#allocation4 + $0x80] sm:$0xff]  ;;  %2403 = vst.msk [vmem:[#allocation4 + $0x90] sm:$0xff] %vm2028_vm1, %v2371_v17 }
 0x1dc   : > { %v2825_v55 = vadd.f32 %v4302_v20, %v2789_v52  ;;  %2758 = vst.msk [vmem:[#allocation4 + $0x88] sm:$0xff] %vm2028_vm1, %v2726_v4  ;;  %v2662_v0 = vpop.f32.mrf.mxu3  ;;  %v2642_v54 = vpop.f32.mrf.mxu2 }
 0x1dd   : > { %2930 = vst.msk [vmem:[%s4318_s14 + $0x60] sm:$0xf] %vm2905_vm2, %v2897_v51  ;;  %v2735_v58 = vadd.f32 %v2703_v27, %v2662_v0 }
 0x1de   : > { %v2857_v59 = vmax.f32 %v2825_v55, 0.0  ;;  %v2798_v60 = vld [vmem:[#allocation4 + $0xc8] sm:$0xff]  ;;  %v1998_v61 = vpop.f32.mrf.mxu0 }
 0x1df   : > { %v2834_v62 = vadd.f32 %v4302_v20, %v2798_v60  ;;  %v2340_v29 = vld [vmem:[#allocation4 + $0x98] sm:$0xff]  ;;  %2767 = vst.msk [vmem:[#allocation4 + $0xd0] sm:$0xff] %vm2028_vm1, %v2735_v58 }
 0x1e0   : > { %v2889_v63 = vpack.c.bf16 %v2857_v59, %v2857_v59  ;;  %v2372_v53 = vadd.f32 %v2340_v29, %v2288_v46  ;;  %2049 = vst.msk [vmem:[#allocation4 + $0xa0] sm:$0xff] %vm2028_vm1, %v1998_v61 }
 0x1e1   : > { %v2866_v3 = vmax.f32 %v2834_v62, 0.0  ;;  %v2293_v23 = vpop.f32.mrf.mxu1  ;;  %v2707_v62 = vld [vmem:[#allocation4 + $0xf0] sm:$0xff] }
 0x1e2   : > { %2922 = vst.msk [vmem:[%s4318_s14 + $0x40] sm:$0xf] %vm2905_vm2, %v2889_v63  ;;  %v2695_v7 = vld [vmem:[#allocation4 + $0x90] sm:$0xff] }
 0x1e3   : > { %v2898_v8 = vpack.c.bf16 %v2866_v3, %v2866_v3  ;;  %v2790_v10 = vld [vmem:[#allocation4 + $0x88] sm:$0xff]  ;;  %2404 = vst.msk [vmem:[#allocation4 + $0x98] sm:$0xff] %vm2028_vm1, %v2372_v53  ;;  %v2727_v11 = vadd.f32 %v2695_v7, %v2642_v54 }
 0x1e4   : > { %v2826_v12 = vadd.f32 %v4302_v20, %v2790_v10  ;;  %v2664_v13 = vpop.f32.mrf.mxu3  ;;  %v2644_v15 = vpop.f32.mrf.mxu2 }
 0x1e5   : > { %2931 = vst.msk [vmem:[%s4318_s14 + $0x64] sm:$0xf] %vm2905_vm2, %v2898_v8  ;;  %v2736_v40 = vadd.f32 %v2704_v14, %v2664_v13 }
 0x1e6   : > { %v2858_v21 = vmax.f32 %v2826_v12, 0.0  ;;  %v2799_v26 = vld [vmem:[#allocation4 + $0xd0] sm:$0xff]  ;;  %2759 = vst.msk [vmem:[#allocation4 + $0x90] sm:$0xff] %vm2028_vm1, %v2727_v11  ;;  %v2000_v56 = vpop.f32.mrf.mxu0 }
 0x1e7   : > { %v2835_v16 = vadd.f32 %v4302_v20, %v2799_v26  ;;  %v2341_v49 = vld [vmem:[#allocation4 + $0xa0] sm:$0xff]  ;;  %2768 = vst.msk [vmem:[#allocation4 + $0xd8] sm:$0xff] %vm2028_vm1, %v2736_v40 }
 0x1e8   : > { %v2890_v18 = vpack.c.bf16 %v2858_v21, %v2858_v21  ;;  %v2373_v6 = vadd.f32 %v2341_v49, %v2291_v25  ;;  %2050 = vst.msk [vmem:[#allocation4 + $0xa8] sm:$0xff] %vm2028_vm1, %v2000_v56  ;;  %v2708_v56 = vld [vmem:[#allocation4 + $0xf8] sm:$0xff] }
 0x1e9   : > { %v2867_v9 = vmax.f32 %v2835_v16, 0.0  ;;  %v2296_v46 = vpop.f32.mrf.mxu1 }
 0x1ea   : > { %2923 = vst.msk [vmem:[%s4318_s14 + $0x44] sm:$0xf] %vm2905_vm2, %v2890_v18  ;;  %v2696_v19 = vld [vmem:[#allocation4 + $0x98] sm:$0xff] }
 0x1eb   : > { %v2899_v1 = vpack.c.bf16 %v2867_v9, %v2867_v9  ;;  %2405 = vst.msk [vmem:[#allocation4 + $0xa0] sm:$0xff] %vm2028_vm1, %v2373_v6  ;;  %v2728_v32 = vadd.f32 %v2696_v19, %v2644_v15 }
 0x1ec   : > { %v2667_v24 = vpop.f32.mrf.mxu3  ;;  %v2647_v31 = vpop.f32.mrf.mxu2 }
 0x1ed   : > { %2932 = vst.msk [vmem:[%s4318_s14 + $0x68] sm:$0xf] %vm2905_vm2, %v2899_v1  ;;  %v2791_v39 = vld [vmem:[#allocation4 + $0x90] sm:$0xff]  ;;  %v2737_v33 = vadd.f32 %v2705_v28, %v2667_v24 }
 0x1ee   : > { %v2827_v2 = vadd.f32 %v4302_v20, %v2791_v39  ;;  %v2800_v57 = vld [vmem:[#allocation4 + $0xd8] sm:$0xff]  ;;  %2760 = vst.msk [vmem:[#allocation4 + $0x98] sm:$0xff] %vm2028_vm1, %v2728_v32  ;;  %v2003_v34 = vpop.f32.mrf.mxu0 }
 0x1ef   : > { %v2836_v35 = vadd.f32 %v4302_v20, %v2800_v57  ;;  %v2342_v22 = vld [vmem:[#allocation4 + $0xa8] sm:$0xff]  ;;  %2769 = vst.msk [vmem:[#allocation4 + $0xe0] sm:$0xff] %vm2028_vm1, %v2737_v33 }
 0x1f0   : > { %v2859_v36 = vmax.f32 %v2827_v2, 0.0  ;;  %v2374_v30 = vadd.f32 %v2342_v22, %v2293_v23  ;;  %2051 = vst.msk [vmem:[#allocation4 + $0xb0] sm:$0xff] %vm2028_vm1, %v2003_v34 }
 0x1f1   : > { %v2868_v37 = vmax.f32 %v2836_v35, 0.0  ;;  %v2298_v7 = vpop.f32.mrf.mxu1 }
 0x1f2   : > { %v2891_v38 = vpack.c.bf16 %v2859_v36, %v2859_v36  ;;  %2406 = vst.msk [vmem:[#allocation4 + $0xa8] sm:$0xff] %vm2028_vm1, %v2374_v30  ;;  %v2697_v41 = vld [vmem:[#allocation4 + $0xa0] sm:$0xff] }
 0x1f3   : > { %v2900_v43 = vpack.c.bf16 %v2868_v37, %v2868_v37  ;;  %v2729_v42 = vadd.f32 %v2697_v41, %v2647_v31 }
 0x1f4   : > { %2924 = vst.msk [vmem:[%s4318_s14 + $0x48] sm:$0xf] %vm2905_vm2, %v2891_v38  ;;  %v2669_v5 = vpop.f32.mrf.mxu3  ;;  %v2649_v17 = vpop.f32.mrf.mxu2 }
 0x1f5   : > { %2933 = vst.msk [vmem:[%s4318_s14 + $0x6c] sm:$0xf] %vm2905_vm2, %v2900_v43  ;;  %v2792_v45 = vld [vmem:[#allocation4 + $0x98] sm:$0xff]  ;;  %v2738_v47 = vadd.f32 %v2706_v44, %v2669_v5 }
 0x1f6   : > { %v2828_v48 = vadd.f32 %v4302_v20, %v2792_v45  ;;  %v2801_v50 = vld [vmem:[#allocation4 + $0xe0] sm:$0xff]  ;;  %2761 = vst.msk [vmem:[#allocation4 + $0xa0] sm:$0xff] %vm2028_vm1, %v2729_v42  ;;  %v2005_v4 = vpop.f32.mrf.mxu0 }
 0x1f7   : > { %v2837_v51 = vadd.f32 %v4302_v20, %v2801_v50  ;;  %v2343_v52 = vld [vmem:[#allocation4 + $0xb0] sm:$0xff]  ;;  %2770 = vst.msk [vmem:[#allocation4 + $0xe8] sm:$0xff] %vm2028_vm1, %v2738_v47 }
 0x1f8   : > { %v2860_v55 = vmax.f32 %v2828_v48, 0.0  ;;  %v2375_v0 = vadd.f32 %v2343_v52, %v2296_v46  ;;  %2052 = vst.msk [vmem:[#allocation4 + $0xb8] sm:$0xff] %vm2028_vm1, %v2005_v4 }
 0x1f9   : > { %v2869_v27 = vmax.f32 %v2837_v51, 0.0  ;;  %v2698_v54 = vld [vmem:[#allocation4 + $0xa8] sm:$0xff] }
 0x1fa   : > { %v2892_v58 = vpack.c.bf16 %v2860_v55, %v2860_v55  ;;  %2407 = vst.msk [vmem:[#allocation4 + $0xb0] sm:$0xff] %vm2028_vm1, %v2375_v0  ;;  %v2730_v59 = vadd.f32 %v2698_v54, %v2649_v17 }
 0x1fb   : > { %v2901_v60 = vpack.c.bf16 %v2869_v27, %v2869_v27 }
 0x1fc   : > { %2925 = vst.msk [vmem:[%s4318_s14 + $0x4c] sm:$0xf] %vm2905_vm2, %v2892_v58  ;;  %v2672_v61 = vpop.f32.mrf.mxu3  ;;  %v2652_v10 = vpop.f32.mrf.mxu2 }
 0x1fd   : > { %2934 = vst.msk [vmem:[%s4318_s14 + $0x70] sm:$0xf] %vm2905_vm2, %v2901_v60  ;;  %v2793_v29 = vld [vmem:[#allocation4 + $0xa0] sm:$0xff]  ;;  %v2739_v63 = vadd.f32 %v2707_v62, %v2672_v61 }
 0x1fe   : > { %v2829_v53 = vadd.f32 %v4302_v20, %v2793_v29  ;;  %v2802_v3 = vld [vmem:[#allocation4 + $0xe8] sm:$0xff]  ;;  %2762 = vst.msk [vmem:[#allocation4 + $0xa8] sm:$0xff] %vm2028_vm1, %v2730_v59 }
 0x1ff   : > { %v2838_v25 = vadd.f32 %v4302_v20, %v2802_v3  ;;  %v2344_v8 = vld [vmem:[#allocation4 + $0xb8] sm:$0xff]  ;;  %2771 = vst.msk [vmem:[#allocation4 + $0xf0] sm:$0xff] %vm2028_vm1, %v2739_v63 }
 0x200   : > { %v2861_v11 = vmax.f32 %v2829_v53, 0.0  ;;  %v2376_v12 = vadd.f32 %v2344_v8, %v2298_v7 }
 0x201   : > { %v2870_v13 = vmax.f32 %v2838_v25, 0.0  ;;  %v2699_v14 = vld [vmem:[#allocation4 + $0xb0] sm:$0xff] }
 0x202   : > { %v2893_v15 = vpack.c.bf16 %v2861_v11, %v2861_v11  ;;  %2408 = vst.msk [vmem:[#allocation4 + $0xb8] sm:$0xff] %vm2028_vm1, %v2376_v12  ;;  %v2731_v40 = vadd.f32 %v2699_v14, %v2652_v10 }
 0x203   : > { %v2902_v21 = vpack.c.bf16 %v2870_v13, %v2870_v13 }
 0x204   : > { %2926 = vst.msk [vmem:[%s4318_s14 + $0x50] sm:$0xf] %vm2905_vm2, %v2893_v15  ;;  %v2674_v26 = vpop.f32.mrf.mxu3  ;;  %v2654_v32 = vpop.f32.mrf.mxu2 }
 0x205   : > { %2935 = vst.msk [vmem:[%s4318_s14 + $0x74] sm:$0xf] %vm2905_vm2, %v2902_v21  ;;  %v2794_v16 = vld [vmem:[#allocation4 + $0xa8] sm:$0xff]  ;;  %v2740_v49 = vadd.f32 %v2708_v56, %v2674_v26 }
 0x206   : > { %v2830_v18 = vadd.f32 %v4302_v20, %v2794_v16  ;;  %v2803_v6 = vld [vmem:[#allocation4 + $0xf0] sm:$0xff]  ;;  %2763 = vst.msk [vmem:[#allocation4 + $0xb0] sm:$0xff] %vm2028_vm1, %v2731_v40 }
 0x207   : > { %v2839_v9 = vadd.f32 %v4302_v20, %v2803_v6  ;;  %2772 = vst.msk [vmem:[#allocation4 + $0xf8] sm:$0xff] %vm2028_vm1, %v2740_v49 }
 0x208   : > { %v2862_v19 = vmax.f32 %v2830_v18, 0.0 }
 0x209   : > { %v2871_v1 = vmax.f32 %v2839_v9, 0.0  ;;  %v2700_v23 = vld [vmem:[#allocation4 + $0xb8] sm:$0xff] }
 0x20a   : > { %v2894_v24 = vpack.c.bf16 %v2862_v19, %v2862_v19  ;;  %v2732_v28 = vadd.f32 %v2700_v23, %v2654_v32 }
 0x20b   : > { %v2903_v31 = vpack.c.bf16 %v2871_v1, %v2871_v1 }
 0x20c   : > { %2927 = vst.msk [vmem:[%s4318_s14 + $0x54] sm:$0xf] %vm2905_vm2, %v2894_v24 }
 0x20d   : > { %2936 = vst.msk [vmem:[%s4318_s14 + $0x78] sm:$0xf] %vm2905_vm2, %v2903_v31  ;;  %v2795_v39 = vld [vmem:[#allocation4 + $0xb0] sm:$0xff] }
 0x20e   : > { %v2831_v33 = vadd.f32 %v4302_v20, %v2795_v39  ;;  %v2804_v2 = vld [vmem:[#allocation4 + $0xf8] sm:$0xff]  ;;  %2764 = vst.msk [vmem:[#allocation4 + $0xb8] sm:$0xff] %vm2028_vm1, %v2732_v28 }
 0x20f   : > { %v2840_v57 = vadd.f32 %v4302_v20, %v2804_v2 }
 0x210   : > { %v2863_v34 = vmax.f32 %v2831_v33, 0.0 }
 0x211   : > { %v2872_v35 = vmax.f32 %v2840_v57, 0.0 }
 0x212   : > { %v2895_v22 = vpack.c.bf16 %v2863_v34, %v2863_v34 }
 0x213   : > { %v2904_v36 = vpack.c.bf16 %v2872_v35, %v2872_v35 }
 0x214   : > { %2928 = vst.msk [vmem:[%s4318_s14 + $0x58] sm:$0xf] %vm2905_vm2, %v2895_v22 }
 0x215   : > { %2937 = vst.msk [vmem:[%s4318_s14 + $0x7c] sm:$0xf] %vm2905_vm2, %v2904_v36  ;;  %v2796_v30 = vld [vmem:[#allocation4 + $0xb8] sm:$0xff] }
 0x216   : > { %v2832_v37 = vadd.f32 %v4302_v20, %v2796_v30 }
 0x218   : > { %v2864_v38 = vmax.f32 %v2832_v37, 0.0 }
 0x21a   : > { %v2896_v41 = vpack.c.bf16 %v2864_v38, %v2864_v38 }
 0x21c   : > { %2929 = vst.msk [vmem:[%s4318_s14 + $0x5c] sm:$0xf] %vm2905_vm2, %v2896_v41 }
 0x21d   : > { %3575 = shalt.err (!%p3572_p5)
}
 0x21e   : > { %s3637_s12 = smov 64   ;;  %s3638_s13 = smov 4  }
 0x21f   : > { %3461 = dma.vmem_to_hbm [thread:$0]  (%p3704_p4), %s2955_s29, 2048, %s2957_s30, %s2939_s18, %s3637_s12, %s3637_s12, %s3638_s13  }
 0x220 PF: > { %p3467_p6 = scmp.ge.s32.totalorder %s3632_s20, 2  ;;  %s2971_s14 = sand.u32 1, %s3612_s15  }
 0x221   : > { %s2972_s21 = scalar_lea.sflag [#allocation6], %s2971_s14 }
 0x222   : > { %p3464_p7 = pnand %p3467_p6, %p3711_p8 }
 0x224   : > { %p3465_p9 = pneg %p3464_p7 }
 0x226   : > { %3601 = dma.done.wait (%p3465_p9), %s2972_s21, 2048  }
 0x227   : > { %3603 = vsyncadd (%p3465_p9), %s2972_s21, 4294965248  ;;  %s17_s20 = sadd.s32 1, %s3632_s20   ;;  %s4558_s15 = smov %s3616_s16 }
 0x228   : > { %p14_p10 = scmp.ge.s32.totalorder %s17_s20, 4   ;;  %s4559_s16 = smov %s3620_s17 }
 0x229   : > { %s4560_s17 = smov %s3717_s28  ;;  %s4561_s18 = smov %s3628_s19 }
 0x22a   : > { %s4562_s19 = smov %s4564_s23  ;;  %16 = sbr.rel (!%p14_p10) target bundleno = 4 (0x4), region = 79 }
 0x22f   :  { %2978 = vsyncpa [#allocation6], 1 }
 0x230   :  { %2980 = vsyncpa [#allocation6 + $0x1], 1 }

</bundles_post_ra>
